<compile_context>
chip_gen: v7x
topology: tpu7x:2x2x1
jax: 0.10.0
libtpu: 0.0.40
codegen_flags: <defaults>
</compile_context>

<pallas_src>
import functools
import math

import jax
import jax.numpy as jnp
from jax.experimental import pallas as pl
from jax.experimental.pallas import tpu as pltpu


# ---------------------------------------------------------------------------
# Kernel: grid = (batch, q-block, kv-block-within-window)
# ---------------------------------------------------------------------------
def _swa_kernel(xq_ref, xkv_ref, wq_ref, wkv_ref, wo_ref, rq_ref, rkv_ref,
                o_ref,
                q_scr, m_scr, l_scr, acc_scr,
                *, num_heads, head_dim, block_q, left, w_blks, approx_recip):
    H, D, Tq = num_heads, head_dim, block_q
    E = H * D
    qi = pl.program_id(1)
    ki = pl.program_id(2)
    kvb = qi - (w_blks - 1) + ki            # true kv block index (may be negative)

    lane = jax.lax.broadcasted_iota(jnp.int32, (Tq, E), 1)
    is_even = (lane % 2) == 0

    def rope(t, cos_e, sin_signed):
        # interleaved rotary:  out[2i]   = t[2i]*c_i   - t[2i+1]*s_i
        #                      out[2i+1] = t[2i+1]*c_i + t[2i]*s_i
        # = t*cosE + pair_swap(t)*sinE_signed ; pair swap = XLU rolls + VPU select.
        t_next = pltpu.roll(t, shift=E - 1, axis=1)   # t[..., l+1] (np.roll convention)
        t_prev = pltpu.roll(t, shift=1, axis=1)       # t[..., l-1]
        return t * cos_e + jnp.where(is_even, t_next, t_prev) * sin_signed

    # ---- per q-block init: project + rotate q once, reset softmax state -----
    @pl.when(ki == 0)
    def _init():
        q = jnp.dot(xq_ref[0], wq_ref[...],           # bf16 x bf16 -> f32 (MXU)
                    preferred_element_type=jnp.float32)
        q_scr[...] = rope(q, rq_ref[0], rq_ref[1]).astype(jnp.bfloat16)
        m_scr[...] = jnp.full(m_scr.shape, -1e30, dtype=jnp.float32)
        l_scr[...] = jnp.zeros(l_scr.shape, dtype=jnp.float32)
        acc_scr[...] = jnp.zeros(acc_scr.shape, dtype=jnp.float32)

    # ---- one kv block of the sliding window (skip blocks left of seq start) --
    @pl.when(kvb >= 0)
    def _attend():
        kv = jnp.dot(xkv_ref[0], wkv_ref[...],        # (Tq, 2E) f32 accum
                     preferred_element_type=jnp.float32)
        k = rope(kv[:, :E], rkv_ref[0], rkv_ref[1]).astype(jnp.bfloat16)
        v = kv[:, E:].astype(jnp.bfloat16)

        qpos = qi * Tq + jax.lax.broadcasted_iota(jnp.int32, (Tq, Tq), 0)
        kpos = kvb * Tq + jax.lax.broadcasted_iota(jnp.int32, (Tq, Tq), 1)
        mask = (kpos <= qpos) & (kpos >= qpos - left)  # one mask, shared by all heads

        qb = q_scr[...]                                # (Tq, E) bf16, already scaled
        dims = (((1,), (1,)), ((), ()))                # contract head_dim of both sides
        for h in range(H):                             # static unroll; per-head MXU calls
            sl = slice(h * D, (h + 1) * D)
            s = jax.lax.dot_general(qb[:, sl], k[:, sl], dims,
                                    preferred_element_type=jnp.float32)   # (Tq, Tq)
            s = jnp.where(mask, s, -1e30)              # finite sentinel (NaN-safe)
            m_old = m_scr[h]                           # (Tq, 1) f32
            m_new = jnp.maximum(m_old, jnp.max(s, axis=-1, keepdims=True))
            alpha = jnp.exp(m_old - m_new)             # f32 elementwise (v5e-safe)
            p = jnp.where(mask, jnp.exp(s - m_new), 0.0)
            l_scr[h] = alpha * l_scr[h] + jnp.sum(p, axis=-1, keepdims=True)
            acc_scr[:, sl] = alpha * acc_scr[:, sl] + jnp.dot(
                p.astype(jnp.bfloat16), v[:, sl],
                preferred_element_type=jnp.float32)
            m_scr[h] = m_new

    # ---- finalize: normalize and fused output projection ---------------------
    @pl.when(ki == pl.num_programs(2) - 1)
    def _finalize():
        for h in range(H):
            sl = slice(h * D, (h + 1) * D)
            inv_l = (pl.reciprocal(l_scr[h], approx=True) if approx_recip
                     else 1.0 / l_scr[h])
            acc_scr[:, sl] = acc_scr[:, sl] * inv_l
        out = jnp.dot(acc_scr[...].astype(jnp.bfloat16), wo_ref[...],
                      preferred_element_type=jnp.float32)   # single (Tq,E)@(E,E)
        o_ref[0] = out.astype(o_ref.dtype)


# ---------------------------------------------------------------------------
# Wrapper
# ---------------------------------------------------------------------------
def sliding_window_attention_forward(x, wq, wk, wv, wo, cos, sin, *,
                                     num_heads, head_dim, sliding_window,
                                     block_q=None, approx_reciprocal=True,
                                     single_buffer_weights=False):
    """x: (B,S,E); wq/wk/wv/wo: (E,E); cos/sin: (S, head_dim//2) -> (B,S,E)."""
    B, S, E = x.shape
    H, D = num_heads, head_dim
    assert E == H * D, "dim must equal num_heads * head_dim"
    assert sliding_window >= 2
    left = sliding_window - 2                  # flash window_size = (sliding_window-2, 0)
    scale = 1.0 / math.sqrt(D)

    if block_q is None:
        block_q = min(128, S)
    Tq = block_q
    assert S % Tq == 0 and (Tq % 8 == 0 or Tq == S), "bad q-block size"
    nq = S // Tq
    w_blks = min(nq, 1 + pl.cdiv(max(left, 0), Tq))   # kv blocks per q-block window

    f32, bf16 = jnp.float32, jnp.bfloat16
    # bf16 MXU operands; softmax scale folded into Wq (rotary is linear -> exact).
    x_b = x.astype(bf16)
    wq_b = (wq.astype(f32) * scale).astype(bf16)
    wkv_b = jnp.concatenate([wk, wv], axis=1).astype(bf16)        # (E, 2E)
    wo_b = wo.astype(bf16)

    # Interleaved-rotary tables expanded to (2, S, E):
    #   rope_tab[0, :, h*D+2i] = rope_tab[0, :, h*D+2i+1] = cos[:, i]
    #   rope_tab[1, :, h*D+2i] = -sin[:, i] ; rope_tab[1, :, h*D+2i+1] = +sin[:, i]
    cos2 = jnp.repeat(cos.astype(f32), 2, axis=1)                 # (S, D)
    sin2 = jnp.repeat(sin.astype(f32), 2, axis=1)
    sign = jnp.tile(jnp.array([-1.0, 1.0], f32), D // 2)          # (D,)
    rope_tab = jnp.stack([jnp.tile(cos2, (1, H)),
                          jnp.tile(sin2 * sign[None, :], (1, H))], axis=0)  # (2,S,E)

    def kv_block(qi, ki):
        # true kv block is qi-(w_blks-1)+ki; clamp to 0 for the DMA, the kernel
        # skips compute for negative (pre-sequence) blocks.
        return jnp.maximum(qi - (w_blks - 1) + ki, 0)

    # Constant-index weight blocks never change across the grid; single-buffer
    # them on v7x (64 MiB VMEM) via pl.Buffered(1). Off by default.
    wkw = dict(pipeline_mode=pl.Buffered(1)) if single_buffer_weights else {}
    in_specs = [
        pl.BlockSpec((1, Tq, E), lambda b, qi, ki: (b, qi, 0)),                # x (q rows)
        pl.BlockSpec((1, Tq, E), lambda b, qi, ki: (b, kv_block(qi, ki), 0)),  # x (kv rows)
        pl.BlockSpec((E, E), lambda b, qi, ki: (0, 0), **wkw),                 # Wq*scale
        pl.BlockSpec((E, 2 * E), lambda b, qi, ki: (0, 0), **wkw),             # [Wk | Wv]
        pl.BlockSpec((E, E), lambda b, qi, ki: (0, 0), **wkw),                 # Wo
        pl.BlockSpec((2, Tq, E), lambda b, qi, ki: (0, qi, 0)),                # rope (q rows)
        pl.BlockSpec((2, Tq, E), lambda b, qi, ki: (0, kv_block(qi, ki), 0)),  # rope (kv rows)
    ]
    out_spec = pl.BlockSpec((1, Tq, E), lambda b, qi, ki: (b, qi, 0))

    scratch = [
        pltpu.VMEM((Tq, E), bf16),         # rotary'd, pre-scaled q for this q block
        pltpu.VMEM((H, Tq, 1), f32),       # online-softmax running max
        pltpu.VMEM((H, Tq, 1), f32),       # online-softmax running denominator
        pltpu.VMEM((Tq, E), f32),          # output accumulator (heads along lanes)
    ]

    # Explicit scoped-VMEM budget: 2-buffered activations + weights + scratch + headroom.
    act = 2 * 2 * (Tq * E * 2) + 2 * 2 * (2 * Tq * E * 4) + 2 * (Tq * E * x.dtype.itemsize)
    wgt = (1 if single_buffer_weights else 2) * (4 * E * E * 2)
    scr = Tq * E * 2 + Tq * E * 4 + 2 * H * Tq * 128 * 4
    tmp = 8 * Tq * max(Tq, 128) * 4 + 4 * Tq * max(2 * E, 128) * 4
    vmem_limit = int(min(64 << 20, max(32 << 20, 2 * (act + wgt + scr + tmp))))

    kernel = functools.partial(
        _swa_kernel, num_heads=H, head_dim=D, block_q=Tq, left=left,
        w_blks=w_blks, approx_recip=approx_reciprocal)

    return pl.pallas_call(
        kernel,
        out_shape=jax.ShapeDtypeStruct((B, S, E), x.dtype),
        grid=(B, nq, w_blks),
        in_specs=in_specs,
        out_specs=out_spec,
        scratch_shapes=scratch,
        compiler_params=pltpu.CompilerParams(
            # batch + q-block axes shard across TensorCores (v7x megacore);
            # kv axis carries the online-softmax accumulator -> "arbitrary".
            dimension_semantics=("parallel", "parallel", "arbitrary"),
            vmem_limit_bytes=vmem_limit,
        ),
    )(x_b, x_b, wq_b, wkv_b, wo_b, rope_tab, rope_tab)


# ---------------------------------------------------------------------------
# Pure-JAX reference (correctness check)
# ---------------------------------------------------------------------------
def _reference_forward(x, wq, wk, wv, wo, cos, sin, *,
                       num_heads, head_dim, sliding_window):
    B, S, E = x.shape
    H, D = num_heads, head_dim

    def rope(t):  # (B, S, H, D), interleaved rotary
        t1, t2 = t[..., 0::2], t[..., 1::2]
        c = cos[None, :, None, :]
        s = sin[None, :, None, :]
        o1 = t1 * c - t2 * s
        o2 = t1 * s + t2 * c
        return jnp.stack([o1, o2], axis=-1).reshape(t.shape)

    q = rope((x @ wq).reshape(B, S, H, D))
    k = rope((x @ wk).reshape(B, S, H, D))
    v = (x @ wv).reshape(B, S, H, D)
    qh = jnp.transpose(q, (0, 2, 1, 3))
    kh = jnp.transpose(k, (0, 2, 1, 3))
    vh = jnp.transpose(v, (0, 2, 1, 3))
    s_ = jnp.einsum('bhqd,bhkd->bhqk', qh, kh) / math.sqrt(D)
    row = jnp.arange(S)[:, None]
    col = jnp.arange(S)[None, :]
    mask = (col <= row) & (col >= row - (sliding_window - 2))
    s_ = jnp.where(mask[None, None], s_, -jnp.inf)
    p = jax.nn.softmax(s_, axis=-1)
    o = jnp.einsum('bhqk,bhkd->bhqd', p, vh)
    o = jnp.transpose(o, (0, 2, 1, 3)).reshape(B, S, H * D)
    return o @ wo


# ---------------------------------------------------------------------------
# Main
# ---------------------------------------------------------------------------
if __name__ == "__main__":
    # args: dim=128, n_self_heads=4, model_parallel_size=1, sliding_window=5
    dim = 128
    n_heads = 4
    head_dim = dim // n_heads              # 32
    sliding_window = 5
    batch, seq = 2, 16

    key = jax.random.PRNGKey(0)
    kx, kq, kk, kv, ko = jax.random.split(key, 5)

    x = jax.random.normal(kx, (batch, seq, dim), dtype=jnp.float32)
    scale_init = 0.02
    wq = scale_init * jax.random.normal(kq, (dim, dim), dtype=jnp.float32)
    wk = scale_init * jax.random.normal(kk, (dim, dim), dtype=jnp.float32)
    wv = scale_init * jax.random.normal(kv, (dim, dim), dtype=jnp.float32)
    wo = scale_init * jax.random.normal(ko, (dim, dim), dtype=jnp.float32)

    # Rotary tables (rel_pos = (cos, sin)), shape (seq, head_dim//2)
    inv_freq = 1.0 / (10000.0 ** (jnp.arange(0, head_dim, 2, dtype=jnp.float32) / head_dim))
    t = jnp.arange(seq, dtype=jnp.float32)
    freqs = jnp.outer(t, inv_freq)
    cos, sin = jnp.cos(freqs), jnp.sin(freqs)

    # block_q=8 -> 2 q-blocks per batch, 2-block pruned kv window (exercises the
    # multi-block / edge-masked / skipped-block paths of the tiled kernel).
    out = sliding_window_attention_forward(
        x, wq, wk, wv, wo, cos, sin,
        num_heads=n_heads, head_dim=head_dim, sliding_window=sliding_window,
        block_q=8)
    jax.block_until_ready(out)

    assert out.shape == (batch, seq, dim)
    ref = _reference_forward(
        x, wq, wk, wv, wo, cos, sin,
        num_heads=n_heads, head_dim=head_dim, sliding_window=sliding_window)
    assert bool(jnp.all(jnp.isfinite(out)))
    # bf16 MXU operands + approx reciprocal -> small drift vs f32 reference.
    assert bool(jnp.allclose(out, ref, rtol=3e-2, atol=3e-3)), "mismatch vs JAX reference"
    print("KERNEL_OK")
</pallas_src>

<mosaic_0001>
module attributes {stable_mosaic.version = 11 : i64} {
  func.func @_swa_kernel(%arg0: i32, %arg1: i32, %arg2: i32, %arg3: memref<1x8x128xbf16, #tpu.memory_space<vmem>>, %arg4: memref<1x8x128xbf16, #tpu.memory_space<vmem>>, %arg5: memref<128x128xbf16, #tpu.memory_space<vmem>>, %arg6: memref<128x256xbf16, #tpu.memory_space<vmem>>, %arg7: memref<128x128xbf16, #tpu.memory_space<vmem>>, %arg8: memref<2x8x128xf32, #tpu.memory_space<vmem>>, %arg9: memref<2x8x128xf32, #tpu.memory_space<vmem>>, %arg10: memref<1x8x128xf32, #tpu.memory_space<vmem>>, %arg11: memref<8x128xbf16, #tpu.memory_space<vmem>>, %arg12: memref<4x8x1xf32, #tpu.memory_space<vmem>>, %arg13: memref<4x8x1xf32, #tpu.memory_space<vmem>>, %arg14: memref<8x128xf32, #tpu.memory_space<vmem>>) attributes {dimension_semantics = [#tpu.dimension_semantics<parallel>, #tpu.dimension_semantics<parallel>, #tpu.dimension_semantics<arbitrary>], iteration_bounds = array<i64: 2, 2, 2>, scalar_prefetch = 0 : i64, scratch_operands = 4 : i64, tpu.core_type = #tpu.core_type<tc>, window_params = [{transform_indices = @transform_0, window_bounds = array<i64: 1, 8, 128>}, {transform_indices = @transform_1, window_bounds = array<i64: 1, 8, 128>}, {pipeline_mode = #tpu.pipeline_mode<synchronous>, transform_indices = @transform_2, window_bounds = array<i64: 128, 128>}, {pipeline_mode = #tpu.pipeline_mode<synchronous>, transform_indices = @transform_3, window_bounds = array<i64: 128, 256>}, {pipeline_mode = #tpu.pipeline_mode<synchronous>, transform_indices = @transform_4, window_bounds = array<i64: 128, 128>}, {transform_indices = @transform_5, window_bounds = array<i64: 2, 8, 128>}, {transform_indices = @transform_6, window_bounds = array<i64: 2, 8, 128>}, {transform_indices = @transform_7, window_bounds = array<i64: 1, 8, 128>}]} {
    %c1_i32 = arith.constant 1 : i32
    %0 = arith.subi %arg1, %c1_i32 : i32
    %1 = arith.addi %0, %arg2 : i32
    %2 = tpu.iota {dimensions = array<i32: 1>} : vector<8x128xi32>
    %c2_i32 = arith.constant 2 : i32
    %c0_i32 = arith.constant 0 : i32
    %3 = arith.cmpi eq, %c2_i32, %c0_i32 : i32
    %c1_i32_0 = arith.constant 1 : i32
    %4 = arith.select %3, %c1_i32_0, %c2_i32 : i32
    %5 = vector.broadcast %4 : i32 to vector<8x128xi32>
    %6 = arith.remsi %2, %5 : vector<8x128xi32>
    %c0_i32_1 = arith.constant 0 : i32
    %7 = vector.broadcast %c0_i32_1 : i32 to vector<8x128xi32>
    %8 = arith.cmpi ne, %6, %7 : vector<8x128xi32>
    %c0_i32_2 = arith.constant 0 : i32
    %9 = vector.broadcast %c0_i32_2 : i32 to vector<8x128xi32>
    %10 = arith.cmpi slt, %6, %9 : vector<8x128xi32>
    %c0_i32_3 = arith.constant 0 : i32
    %11 = arith.cmpi slt, %4, %c0_i32_3 : i32
    %12 = vector.broadcast %11 : i1 to vector<8x128xi1>
    %13 = vector.broadcast %12 : vector<8x128xi1> to vector<8x128xi1>
    %14 = arith.xori %10, %13 : vector<8x128xi1>
    %15 = arith.andi %14, %8 : vector<8x128xi1>
    %16 = vector.broadcast %4 : i32 to vector<8x128xi32>
    %17 = arith.addi %6, %16 : vector<8x128xi32>
    %18 = arith.select %15, %17, %6 : vector<8x128xi1>, vector<8x128xi32>
    %c0_i32_4 = arith.constant 0 : i32
    %19 = vector.broadcast %c0_i32_4 : i32 to vector<8x128xi32>
    %20 = arith.cmpi eq, %18, %19 : vector<8x128xi32>
    %c0_i32_5 = arith.constant 0 : i32
    %21 = arith.cmpi eq, %arg2, %c0_i32_5 : i32
    %22 = arith.extui %21 : i1 to i32
    %c0_i32_6 = arith.constant 0 : i32
    %23 = arith.cmpi ne, %22, %c0_i32_6 : i32
    scf.if %23 {
      %c0 = arith.constant 0 : index
      %c0_11 = arith.constant 0 : index
      %c0_12 = arith.constant 0 : index
      %30 = vector.load %arg3[%c0, %c0_11, %c0_12] : memref<1x8x128xbf16, #tpu.memory_space<vmem>>, vector<1x8x128xbf16>
      %31 = vector.shape_cast %30 : vector<1x8x128xbf16> to vector<8x128xbf16>
      %c0_13 = arith.constant 0 : index
      %c0_14 = arith.constant 0 : index
      %32 = vector.load %arg5[%c0_13, %c0_14] : memref<128x128xbf16, #tpu.memory_space<vmem>>, vector<128x128xbf16>
      %cst = arith.constant dense<0.000000e+00> : vector<8x128xf32>
      %33 = tpu.matmul %31, %32, %cst {dimension_numbers = #tpu.dot_dimension_numbers<[1], [0], [0], [1], [0, 0, 1, 1], [], []>} : vector<8x128xbf16>, vector<128x128xbf16>, vector<8x128xf32> -> vector<8x128xf32>
      %c0_15 = arith.constant 0 : index
      %c0_16 = arith.constant 0 : index
      %c0_17 = arith.constant 0 : index
      %34 = vector.load %arg8[%c0_15, %c0_16, %c0_17] : memref<2x8x128xf32, #tpu.memory_space<vmem>>, vector<1x8x128xf32>
      %35 = vector.shape_cast %34 : vector<1x8x128xf32> to vector<8x128xf32>
      %c1 = arith.constant 1 : index
      %c0_18 = arith.constant 0 : index
      %c0_19 = arith.constant 0 : index
      %36 = vector.load %arg8[%c1, %c0_18, %c0_19] : memref<2x8x128xf32, #tpu.memory_space<vmem>>, vector<1x8x128xf32>
      %37 = vector.shape_cast %36 : vector<1x8x128xf32> to vector<8x128xf32>
      %c127_i32 = arith.constant 127 : i32
      %38 = tpu.dynamic_rotate %33 by %c127_i32 dim 1 : vector<8x128xf32>, i32 -> vector<8x128xf32>
      %c1_i32_20 = arith.constant 1 : i32
      %39 = tpu.dynamic_rotate %33 by %c1_i32_20 dim 1 : vector<8x128xf32>, i32 -> vector<8x128xf32>
      %40 = arith.mulf %33, %35 : vector<8x128xf32>
      %41 = arith.select %20, %38, %39 : vector<8x128xi1>, vector<8x128xf32>
      %42 = arith.mulf %41, %37 : vector<8x128xf32>
      %43 = arith.addf %40, %42 : vector<8x128xf32>
      %44 = arith.truncf %43 : vector<8x128xf32> to vector<8x128xbf16>
      %c0_21 = arith.constant 0 : index
      %c0_22 = arith.constant 0 : index
      %45 = vector.load %arg11[%c0_21, %c0_22] : memref<8x128xbf16, #tpu.memory_space<vmem>>, vector<8x128xbf16>
      tpu.vector_store %arg11[%c0_21, %c0_22], %44 {strides = array<i32>} : memref<8x128xbf16, #tpu.memory_space<vmem>>, vector<8x128xbf16>,
      %cst_23 = arith.constant -1.000000e+30 : f32
      %46 = vector.broadcast %cst_23 : f32 to vector<4x8x1xf32>
      %c0_24 = arith.constant 0 : index
      %c0_25 = arith.constant 0 : index
      %c0_26 = arith.constant 0 : index
      %47 = vector.load %arg12[%c0_24, %c0_25, %c0_26] : memref<4x8x1xf32, #tpu.memory_space<vmem>>, vector<4x8x1xf32>
      tpu.vector_store %arg12[%c0_24, %c0_25, %c0_26], %46 {strides = array<i32>} : memref<4x8x1xf32, #tpu.memory_space<vmem>>, vector<4x8x1xf32>,
      %cst_27 = arith.constant 0.000000e+00 : f32
      %48 = vector.broadcast %cst_27 : f32 to vector<4x8x1xf32>
      %c0_28 = arith.constant 0 : index
      %c0_29 = arith.constant 0 : index
      %c0_30 = arith.constant 0 : index
      %49 = vector.load %arg13[%c0_28, %c0_29, %c0_30] : memref<4x8x1xf32, #tpu.memory_space<vmem>>, vector<4x8x1xf32>
      tpu.vector_store %arg13[%c0_28, %c0_29, %c0_30], %48 {strides = array<i32>} : memref<4x8x1xf32, #tpu.memory_space<vmem>>, vector<4x8x1xf32>,
      %cst_31 = arith.constant 0.000000e+00 : f32
      %50 = vector.broadcast %cst_31 : f32 to vector<8x128xf32>
      %c0_32 = arith.constant 0 : index
      %c0_33 = arith.constant 0 : index
      %51 = vector.load %arg14[%c0_32, %c0_33] : memref<8x128xf32, #tpu.memory_space<vmem>>, vector<8x128xf32>
      tpu.vector_store %arg14[%c0_32, %c0_33], %50 {strides = array<i32>} : memref<8x128xf32, #tpu.memory_space<vmem>>, vector<8x128xf32>,
    } else {
    }
    %c0_i32_7 = arith.constant 0 : i32
    %24 = arith.cmpi sge, %1, %c0_i32_7 : i32
    %25 = arith.extui %24 : i1 to i32
    %c0_i32_8 = arith.constant 0 : i32
    %26 = arith.cmpi ne, %25, %c0_i32_8 : i32
    scf.if %26 {
      %c0 = arith.constant 0 : index
      %c0_11 = arith.constant 0 : index
      %c0_12 = arith.constant 0 : index
      %30 = vector.load %arg4[%c0, %c0_11, %c0_12] : memref<1x8x128xbf16, #tpu.memory_space<vmem>>, vector<1x8x128xbf16>
      %31 = vector.shape_cast %30 : vector<1x8x128xbf16> to vector<8x128xbf16>
      %c0_13 = arith.constant 0 : index
      %c0_14 = arith.constant 0 : index
      %32 = vector.load %arg6[%c0_13, %c0_14] : memref<128x256xbf16, #tpu.memory_space<vmem>>, vector<128x256xbf16>
      %cst = arith.constant dense<0.000000e+00> : vector<8x256xf32>
      %33 = tpu.matmul %31, %32, %cst {dimension_numbers = #tpu.dot_dimension_numbers<[1], [0], [0], [1], [0, 0, 1, 1], [], []>} : vector<8x128xbf16>, vector<128x256xbf16>, vector<8x256xf32> -> vector<8x256xf32>
      %34 = vector.extract_strided_slice %33 {offsets = [0, 0], sizes = [8, 128], strides = [1, 1]} : vector<8x256xf32> to vector<8x128xf32>
      %c0_15 = arith.constant 0 : index
      %c0_16 = arith.constant 0 : index
      %c0_17 = arith.constant 0 : index
      %35 = vector.load %arg9[%c0_15, %c0_16, %c0_17] : memref<2x8x128xf32, #tpu.memory_space<vmem>>, vector<1x8x128xf32>
      %36 = vector.shape_cast %35 : vector<1x8x128xf32> to vector<8x128xf32>
      %c1 = arith.constant 1 : index
      %c0_18 = arith.constant 0 : index
      %c0_19 = arith.constant 0 : index
      %37 = vector.load %arg9[%c1, %c0_18, %c0_19] : memref<2x8x128xf32, #tpu.memory_space<vmem>>, vector<1x8x128xf32>
      %38 = vector.shape_cast %37 : vector<1x8x128xf32> to vector<8x128xf32>
      %c127_i32 = arith.constant 127 : i32
      %39 = tpu.dynamic_rotate %34 by %c127_i32 dim 1 : vector<8x128xf32>, i32 -> vector<8x128xf32>
      %c1_i32_20 = arith.constant 1 : i32
      %40 = tpu.dynamic_rotate %34 by %c1_i32_20 dim 1 : vector<8x128xf32>, i32 -> vector<8x128xf32>
      %41 = arith.mulf %34, %36 : vector<8x128xf32>
      %42 = arith.select %20, %39, %40 : vector<8x128xi1>, vector<8x128xf32>
      %43 = arith.mulf %42, %38 : vector<8x128xf32>
      %44 = arith.addf %41, %43 : vector<8x128xf32>
      %45 = arith.truncf %44 : vector<8x128xf32> to vector<8x128xbf16>
      %46 = vector.extract_strided_slice %33 {offsets = [0, 128], sizes = [8, 128], strides = [1, 1]} : vector<8x256xf32> to vector<8x128xf32>
      %47 = arith.truncf %46 : vector<8x128xf32> to vector<8x128xbf16>
      %c8_i32 = arith.constant 8 : i32
      %48 = arith.muli %arg1, %c8_i32 : i32
      %49 = tpu.iota {dimensions = array<i32: 0>} : vector<8x8xi32>
      %50 = vector.broadcast %48 : i32 to vector<8x8xi32>
      %51 = arith.addi %50, %49 : vector<8x8xi32>
      %c8_i32_21 = arith.constant 8 : i32
      %52 = arith.muli %1, %c8_i32_21 : i32
      %53 = tpu.iota {dimensions = array<i32: 1>} : vector<8x8xi32>
      %54 = vector.broadcast %52 : i32 to vector<8x8xi32>
      %55 = arith.addi %54, %53 : vector<8x8xi32>
      %56 = arith.cmpi sle, %55, %51 : vector<8x8xi32>
      %c3_i32 = arith.constant 3 : i32
      %57 = vector.broadcast %c3_i32 : i32 to vector<8x8xi32>
      %58 = arith.subi %51, %57 : vector<8x8xi32>
      %59 = arith.cmpi sge, %55, %58 : vector<8x8xi32>
      %60 = arith.andi %56, %59 : vector<8x8xi1>
      %c0_22 = arith.constant 0 : index
      %c0_23 = arith.constant 0 : index
      %61 = vector.load %arg11[%c0_22, %c0_23] : memref<8x128xbf16, #tpu.memory_space<vmem>>, vector<8x128xbf16>
      %62 = vector.extract_strided_slice %61 {offsets = [0, 0], sizes = [8, 32], strides = [1, 1]} : vector<8x128xbf16> to vector<8x32xbf16>
      %63 = vector.extract_strided_slice %45 {offsets = [0, 0], sizes = [8, 32], strides = [1, 1]} : vector<8x128xbf16> to vector<8x32xbf16>
      %cst_24 = arith.constant dense<0.000000e+00> : vector<8x8xf32>
      %64 = tpu.matmul %62, %63, %cst_24 {dimension_numbers = #tpu.dot_dimension_numbers<[1], [1], [0], [0], [0, 0, 1, 0], [], []>} : vector<8x32xbf16>, vector<8x32xbf16>, vector<8x8xf32> -> vector<8x8xf32>
      %cst_25 = arith.constant -1.000000e+30 : f32
      %65 = vector.broadcast %cst_25 : f32 to vector<8x8xf32>
      %66 = arith.select %60, %64, %65 : vector<8x8xi1>, vector<8x8xf32>
      %c0_26 = arith.constant 0 : index
      %c0_27 = arith.constant 0 : index
      %c0_28 = arith.constant 0 : index
      %67 = vector.load %arg12[%c0_26, %c0_27, %c0_28] : memref<4x8x1xf32, #tpu.memory_space<vmem>>, vector<1x8x1xf32>
      %68 = vector.shape_cast %67 : vector<1x8x1xf32> to vector<8x1xf32>
      %cst_29 = arith.constant dense<0xFF800000> : vector<8xf32>
      %69 = vector.multi_reduction <maximumf>, %66, %cst_29 [1] : vector<8x8xf32> to vector<8xf32>
      %70 = vector.shape_cast %69 : vector<8xf32> to vector<8x1xf32>
      %71 = arith.maximumf %68, %70 : vector<8x1xf32>
      %72 = arith.subf %68, %71 : vector<8x1xf32>
      %73 = math.exp %72 : vector<8x1xf32>
      %74 = vector.broadcast %71 : vector<8x1xf32> to vector<8x8xf32>
      %75 = arith.subf %66, %74 : vector<8x8xf32>
      %76 = math.exp %75 : vector<8x8xf32>
      %cst_30 = arith.constant 0.000000e+00 : f32
      %77 = vector.broadcast %cst_30 : f32 to vector<8x8xf32>
      %78 = arith.select %60, %76, %77 : vector<8x8xi1>, vector<8x8xf32>
      %c0_31 = arith.constant 0 : index
      %c0_32 = arith.constant 0 : index
      %c0_33 = arith.constant 0 : index
      %79 = vector.load %arg13[%c0_31, %c0_32, %c0_33] : memref<4x8x1xf32, #tpu.memory_space<vmem>>, vector<1x8x1xf32>
      %80 = vector.shape_cast %79 : vector<1x8x1xf32> to vector<8x1xf32>
      %81 = arith.mulf %73, %80 : vector<8x1xf32>
      %cst_34 = arith.constant dense<0.000000e+00> : vector<8xf32>
      %82 = vector.multi_reduction <add>, %78, %cst_34 [1] : vector<8x8xf32> to vector<8xf32>
      %83 = vector.shape_cast %82 : vector<8xf32> to vector<8x1xf32>
      %84 = arith.addf %81, %83 : vector<8x1xf32>
      %c0_35 = arith.constant 0 : index
      %c0_36 = arith.constant 0 : index
      %c0_37 = arith.constant 0 : index
      %85 = vector.load %arg13[%c0_35, %c0_36, %c0_37] : memref<4x8x1xf32, #tpu.memory_space<vmem>>, vector<1x8x1xf32>
      %86 = vector.shape_cast %85 : vector<1x8x1xf32> to vector<8x1xf32>
      %87 = vector.shape_cast %84 : vector<8x1xf32> to vector<1x8x1xf32>
      tpu.vector_store %arg13[%c0_35, %c0_36, %c0_37], %87 {strides = array<i32>} : memref<4x8x1xf32, #tpu.memory_space<vmem>>, vector<1x8x1xf32>,
      %c0_38 = arith.constant 0 : index
      %c0_39 = arith.constant 0 : index
      %88 = vector.load %arg14[%c0_38, %c0_39] : memref<8x128xf32, #tpu.memory_space<vmem>>, vector<8x32xf32>
      %89 = vector.broadcast %73 : vector<8x1xf32> to vector<8x32xf32>
      %90 = arith.mulf %89, %88 : vector<8x32xf32>
      %91 = arith.truncf %78 : vector<8x8xf32> to vector<8x8xbf16>
      %92 = vector.extract_strided_slice %47 {offsets = [0, 0], sizes = [8, 32], strides = [1, 1]} : vector<8x128xbf16> to vector<8x32xbf16>
      %cst_40 = arith.constant dense<0.000000e+00> : vector<8x32xf32>
      %93 = tpu.matmul %91, %92, %cst_40 {dimension_numbers = #tpu.dot_dimension_numbers<[1], [0], [0], [1], [0, 0, 1, 1], [], []>} : vector<8x8xbf16>, vector<8x32xbf16>, vector<8x32xf32> -> vector<8x32xf32>
      %94 = arith.addf %90, %93 : vector<8x32xf32>
      %c0_41 = arith.constant 0 : index
      %c0_42 = arith.constant 0 : index
      %95 = vector.load %arg14[%c0_41, %c0_42] : memref<8x128xf32, #tpu.memory_space<vmem>>, vector<8x32xf32>
      tpu.vector_store %arg14[%c0_41, %c0_42], %94 {strides = array<i32>} : memref<8x128xf32, #tpu.memory_space<vmem>>, vector<8x32xf32>,
      %c0_43 = arith.constant 0 : index
      %c0_44 = arith.constant 0 : index
      %c0_45 = arith.constant 0 : index
      %96 = vector.load %arg12[%c0_43, %c0_44, %c0_45] : memref<4x8x1xf32, #tpu.memory_space<vmem>>, vector<1x8x1xf32>
      %97 = vector.shape_cast %96 : vector<1x8x1xf32> to vector<8x1xf32>
      %98 = vector.shape_cast %71 : vector<8x1xf32> to vector<1x8x1xf32>
      tpu.vector_store %arg12[%c0_43, %c0_44, %c0_45], %98 {strides = array<i32>} : memref<4x8x1xf32, #tpu.memory_space<vmem>>, vector<1x8x1xf32>,
      %99 = vector.extract_strided_slice %61 {offsets = [0, 32], sizes = [8, 32], strides = [1, 1]} : vector<8x128xbf16> to vector<8x32xbf16>
      %100 = vector.extract_strided_slice %45 {offsets = [0, 32], sizes = [8, 32], strides = [1, 1]} : vector<8x128xbf16> to vector<8x32xbf16>
      %cst_46 = arith.constant dense<0.000000e+00> : vector<8x8xf32>
      %101 = tpu.matmul %99, %100, %cst_46 {dimension_numbers = #tpu.dot_dimension_numbers<[1], [1], [0], [0], [0, 0, 1, 0], [], []>} : vector<8x32xbf16>, vector<8x32xbf16>, vector<8x8xf32> -> vector<8x8xf32>
      %cst_47 = arith.constant -1.000000e+30 : f32
      %102 = vector.broadcast %cst_47 : f32 to vector<8x8xf32>
      %103 = arith.select %60, %101, %102 : vector<8x8xi1>, vector<8x8xf32>
      %c1_48 = arith.constant 1 : index
      %c0_49 = arith.constant 0 : index
      %c0_50 = arith.constant 0 : index
      %104 = vector.load %arg12[%c1_48, %c0_49, %c0_50] : memref<4x8x1xf32, #tpu.memory_space<vmem>>, vector<1x8x1xf32>
      %105 = vector.shape_cast %104 : vector<1x8x1xf32> to vector<8x1xf32>
      %cst_51 = arith.constant dense<0xFF800000> : vector<8xf32>
      %106 = vector.multi_reduction <maximumf>, %103, %cst_51 [1] : vector<8x8xf32> to vector<8xf32>
      %107 = vector.shape_cast %106 : vector<8xf32> to vector<8x1xf32>
      %108 = arith.maximumf %105, %107 : vector<8x1xf32>
      %109 = arith.subf %105, %108 : vector<8x1xf32>
      %110 = math.exp %109 : vector<8x1xf32>
      %111 = vector.broadcast %108 : vector<8x1xf32> to vector<8x8xf32>
      %112 = arith.subf %103, %111 : vector<8x8xf32>
      %113 = math.exp %112 : vector<8x8xf32>
      %cst_52 = arith.constant 0.000000e+00 : f32
      %114 = vector.broadcast %cst_52 : f32 to vector<8x8xf32>
      %115 = arith.select %60, %113, %114 : vector<8x8xi1>, vector<8x8xf32>
      %c1_53 = arith.constant 1 : index
      %c0_54 = arith.constant 0 : index
      %c0_55 = arith.constant 0 : index
      %116 = vector.load %arg13[%c1_53, %c0_54, %c0_55] : memref<4x8x1xf32, #tpu.memory_space<vmem>>, vector<1x8x1xf32>
      %117 = vector.shape_cast %116 : vector<1x8x1xf32> to vector<8x1xf32>
      %118 = arith.mulf %110, %117 : vector<8x1xf32>
      %cst_56 = arith.constant dense<0.000000e+00> : vector<8xf32>
      %119 = vector.multi_reduction <add>, %115, %cst_56 [1] : vector<8x8xf32> to vector<8xf32>
      %120 = vector.shape_cast %119 : vector<8xf32> to vector<8x1xf32>
      %121 = arith.addf %118, %120 : vector<8x1xf32>
      %c1_57 = arith.constant 1 : index
      %c0_58 = arith.constant 0 : index
      %c0_59 = arith.constant 0 : index
      %122 = vector.load %arg13[%c1_57, %c0_58, %c0_59] : memref<4x8x1xf32, #tpu.memory_space<vmem>>, vector<1x8x1xf32>
      %123 = vector.shape_cast %122 : vector<1x8x1xf32> to vector<8x1xf32>
      %124 = vector.shape_cast %121 : vector<8x1xf32> to vector<1x8x1xf32>
      tpu.vector_store %arg13[%c1_57, %c0_58, %c0_59], %124 {strides = array<i32>} : memref<4x8x1xf32, #tpu.memory_space<vmem>>, vector<1x8x1xf32>,
      %c0_60 = arith.constant 0 : index
      %c32 = arith.constant 32 : index
      %125 = vector.load %arg14[%c0_60, %c32] : memref<8x128xf32, #tpu.memory_space<vmem>>, vector<8x32xf32>
      %126 = vector.broadcast %110 : vector<8x1xf32> to vector<8x32xf32>
      %127 = arith.mulf %126, %125 : vector<8x32xf32>
      %128 = arith.truncf %115 : vector<8x8xf32> to vector<8x8xbf16>
      %129 = vector.extract_strided_slice %47 {offsets = [0, 32], sizes = [8, 32], strides = [1, 1]} : vector<8x128xbf16> to vector<8x32xbf16>
      %cst_61 = arith.constant dense<0.000000e+00> : vector<8x32xf32>
      %130 = tpu.matmul %128, %129, %cst_61 {dimension_numbers = #tpu.dot_dimension_numbers<[1], [0], [0], [1], [0, 0, 1, 1], [], []>} : vector<8x8xbf16>, vector<8x32xbf16>, vector<8x32xf32> -> vector<8x32xf32>
      %131 = arith.addf %127, %130 : vector<8x32xf32>
      %c0_62 = arith.constant 0 : index
      %c32_63 = arith.constant 32 : index
      %132 = vector.load %arg14[%c0_62, %c32_63] : memref<8x128xf32, #tpu.memory_space<vmem>>, vector<8x32xf32>
      tpu.vector_store %arg14[%c0_62, %c32_63], %131 {strides = array<i32>} : memref<8x128xf32, #tpu.memory_space<vmem>>, vector<8x32xf32>,
      %c1_64 = arith.constant 1 : index
      %c0_65 = arith.constant 0 : index
      %c0_66 = arith.constant 0 : index
      %133 = vector.load %arg12[%c1_64, %c0_65, %c0_66] : memref<4x8x1xf32, #tpu.memory_space<vmem>>, vector<1x8x1xf32>
      %134 = vector.shape_cast %133 : vector<1x8x1xf32> to vector<8x1xf32>
      %135 = vector.shape_cast %108 : vector<8x1xf32> to vector<1x8x1xf32>
      tpu.vector_store %arg12[%c1_64, %c0_65, %c0_66], %135 {strides = array<i32>} : memref<4x8x1xf32, #tpu.memory_space<vmem>>, vector<1x8x1xf32>,
      %136 = vector.extract_strided_slice %61 {offsets = [0, 64], sizes = [8, 32], strides = [1, 1]} : vector<8x128xbf16> to vector<8x32xbf16>
      %137 = vector.extract_strided_slice %45 {offsets = [0, 64], sizes = [8, 32], strides = [1, 1]} : vector<8x128xbf16> to vector<8x32xbf16>
      %cst_67 = arith.constant dense<0.000000e+00> : vector<8x8xf32>
      %138 = tpu.matmul %136, %137, %cst_67 {dimension_numbers = #tpu.dot_dimension_numbers<[1], [1], [0], [0], [0, 0, 1, 0], [], []>} : vector<8x32xbf16>, vector<8x32xbf16>, vector<8x8xf32> -> vector<8x8xf32>
      %cst_68 = arith.constant -1.000000e+30 : f32
      %139 = vector.broadcast %cst_68 : f32 to vector<8x8xf32>
      %140 = arith.select %60, %138, %139 : vector<8x8xi1>, vector<8x8xf32>
      %c2 = arith.constant 2 : index
      %c0_69 = arith.constant 0 : index
      %c0_70 = arith.constant 0 : index
      %141 = vector.load %arg12[%c2, %c0_69, %c0_70] : memref<4x8x1xf32, #tpu.memory_space<vmem>>, vector<1x8x1xf32>
      %142 = vector.shape_cast %141 : vector<1x8x1xf32> to vector<8x1xf32>
      %cst_71 = arith.constant dense<0xFF800000> : vector<8xf32>
      %143 = vector.multi_reduction <maximumf>, %140, %cst_71 [1] : vector<8x8xf32> to vector<8xf32>
      %144 = vector.shape_cast %143 : vector<8xf32> to vector<8x1xf32>
      %145 = arith.maximumf %142, %144 : vector<8x1xf32>
      %146 = arith.subf %142, %145 : vector<8x1xf32>
      %147 = math.exp %146 : vector<8x1xf32>
      %148 = vector.broadcast %145 : vector<8x1xf32> to vector<8x8xf32>
      %149 = arith.subf %140, %148 : vector<8x8xf32>
      %150 = math.exp %149 : vector<8x8xf32>
      %cst_72 = arith.constant 0.000000e+00 : f32
      %151 = vector.broadcast %cst_72 : f32 to vector<8x8xf32>
      %152 = arith.select %60, %150, %151 : vector<8x8xi1>, vector<8x8xf32>
      %c2_73 = arith.constant 2 : index
      %c0_74 = arith.constant 0 : index
      %c0_75 = arith.constant 0 : index
      %153 = vector.load %arg13[%c2_73, %c0_74, %c0_75] : memref<4x8x1xf32, #tpu.memory_space<vmem>>, vector<1x8x1xf32>
      %154 = vector.shape_cast %153 : vector<1x8x1xf32> to vector<8x1xf32>
      %155 = arith.mulf %147, %154 : vector<8x1xf32>
      %cst_76 = arith.constant dense<0.000000e+00> : vector<8xf32>
      %156 = vector.multi_reduction <add>, %152, %cst_76 [1] : vector<8x8xf32> to vector<8xf32>
      %157 = vector.shape_cast %156 : vector<8xf32> to vector<8x1xf32>
      %158 = arith.addf %155, %157 : vector<8x1xf32>
      %c2_77 = arith.constant 2 : index
      %c0_78 = arith.constant 0 : index
      %c0_79 = arith.constant 0 : index
      %159 = vector.load %arg13[%c2_77, %c0_78, %c0_79] : memref<4x8x1xf32, #tpu.memory_space<vmem>>, vector<1x8x1xf32>
      %160 = vector.shape_cast %159 : vector<1x8x1xf32> to vector<8x1xf32>
      %161 = vector.shape_cast %158 : vector<8x1xf32> to vector<1x8x1xf32>
      tpu.vector_store %arg13[%c2_77, %c0_78, %c0_79], %161 {strides = array<i32>} : memref<4x8x1xf32, #tpu.memory_space<vmem>>, vector<1x8x1xf32>,
      %c0_80 = arith.constant 0 : index
      %c64 = arith.constant 64 : index
      %162 = vector.load %arg14[%c0_80, %c64] : memref<8x128xf32, #tpu.memory_space<vmem>>, vector<8x32xf32>
      %163 = vector.broadcast %147 : vector<8x1xf32> to vector<8x32xf32>
      %164 = arith.mulf %163, %162 : vector<8x32xf32>
      %165 = arith.truncf %152 : vector<8x8xf32> to vector<8x8xbf16>
      %166 = vector.extract_strided_slice %47 {offsets = [0, 64], sizes = [8, 32], strides = [1, 1]} : vector<8x128xbf16> to vector<8x32xbf16>
      %cst_81 = arith.constant dense<0.000000e+00> : vector<8x32xf32>
      %167 = tpu.matmul %165, %166, %cst_81 {dimension_numbers = #tpu.dot_dimension_numbers<[1], [0], [0], [1], [0, 0, 1, 1], [], []>} : vector<8x8xbf16>, vector<8x32xbf16>, vector<8x32xf32> -> vector<8x32xf32>
      %168 = arith.addf %164, %167 : vector<8x32xf32>
      %c0_82 = arith.constant 0 : index
      %c64_83 = arith.constant 64 : index
      %169 = vector.load %arg14[%c0_82, %c64_83] : memref<8x128xf32, #tpu.memory_space<vmem>>, vector<8x32xf32>
      tpu.vector_store %arg14[%c0_82, %c64_83], %168 {strides = array<i32>} : memref<8x128xf32, #tpu.memory_space<vmem>>, vector<8x32xf32>,
      %c2_84 = arith.constant 2 : index
      %c0_85 = arith.constant 0 : index
      %c0_86 = arith.constant 0 : index
      %170 = vector.load %arg12[%c2_84, %c0_85, %c0_86] : memref<4x8x1xf32, #tpu.memory_space<vmem>>, vector<1x8x1xf32>
      %171 = vector.shape_cast %170 : vector<1x8x1xf32> to vector<8x1xf32>
      %172 = vector.shape_cast %145 : vector<8x1xf32> to vector<1x8x1xf32>
      tpu.vector_store %arg12[%c2_84, %c0_85, %c0_86], %172 {strides = array<i32>} : memref<4x8x1xf32, #tpu.memory_space<vmem>>, vector<1x8x1xf32>,
      %173 = vector.extract_strided_slice %61 {offsets = [0, 96], sizes = [8, 32], strides = [1, 1]} : vector<8x128xbf16> to vector<8x32xbf16>
      %174 = vector.extract_strided_slice %45 {offsets = [0, 96], sizes = [8, 32], strides = [1, 1]} : vector<8x128xbf16> to vector<8x32xbf16>
      %cst_87 = arith.constant dense<0.000000e+00> : vector<8x8xf32>
      %175 = tpu.matmul %173, %174, %cst_87 {dimension_numbers = #tpu.dot_dimension_numbers<[1], [1], [0], [0], [0, 0, 1, 0], [], []>} : vector<8x32xbf16>, vector<8x32xbf16>, vector<8x8xf32> -> vector<8x8xf32>
      %cst_88 = arith.constant -1.000000e+30 : f32
      %176 = vector.broadcast %cst_88 : f32 to vector<8x8xf32>
      %177 = arith.select %60, %175, %176 : vector<8x8xi1>, vector<8x8xf32>
      %c3 = arith.constant 3 : index
      %c0_89 = arith.constant 0 : index
      %c0_90 = arith.constant 0 : index
      %178 = vector.load %arg12[%c3, %c0_89, %c0_90] : memref<4x8x1xf32, #tpu.memory_space<vmem>>, vector<1x8x1xf32>
      %179 = vector.shape_cast %178 : vector<1x8x1xf32> to vector<8x1xf32>
      %cst_91 = arith.constant dense<0xFF800000> : vector<8xf32>
      %180 = vector.multi_reduction <maximumf>, %177, %cst_91 [1] : vector<8x8xf32> to vector<8xf32>
      %181 = vector.shape_cast %180 : vector<8xf32> to vector<8x1xf32>
      %182 = arith.maximumf %179, %181 : vector<8x1xf32>
      %183 = arith.subf %179, %182 : vector<8x1xf32>
      %184 = math.exp %183 : vector<8x1xf32>
      %185 = vector.broadcast %182 : vector<8x1xf32> to vector<8x8xf32>
      %186 = arith.subf %177, %185 : vector<8x8xf32>
      %187 = math.exp %186 : vector<8x8xf32>
      %cst_92 = arith.constant 0.000000e+00 : f32
      %188 = vector.broadcast %cst_92 : f32 to vector<8x8xf32>
      %189 = arith.select %60, %187, %188 : vector<8x8xi1>, vector<8x8xf32>
      %c3_93 = arith.constant 3 : index
      %c0_94 = arith.constant 0 : index
      %c0_95 = arith.constant 0 : index
      %190 = vector.load %arg13[%c3_93, %c0_94, %c0_95] : memref<4x8x1xf32, #tpu.memory_space<vmem>>, vector<1x8x1xf32>
      %191 = vector.shape_cast %190 : vector<1x8x1xf32> to vector<8x1xf32>
      %192 = arith.mulf %184, %191 : vector<8x1xf32>
      %cst_96 = arith.constant dense<0.000000e+00> : vector<8xf32>
      %193 = vector.multi_reduction <add>, %189, %cst_96 [1] : vector<8x8xf32> to vector<8xf32>
      %194 = vector.shape_cast %193 : vector<8xf32> to vector<8x1xf32>
      %195 = arith.addf %192, %194 : vector<8x1xf32>
      %c3_97 = arith.constant 3 : index
      %c0_98 = arith.constant 0 : index
      %c0_99 = arith.constant 0 : index
      %196 = vector.load %arg13[%c3_97, %c0_98, %c0_99] : memref<4x8x1xf32, #tpu.memory_space<vmem>>, vector<1x8x1xf32>
      %197 = vector.shape_cast %196 : vector<1x8x1xf32> to vector<8x1xf32>
      %198 = vector.shape_cast %195 : vector<8x1xf32> to vector<1x8x1xf32>
      tpu.vector_store %arg13[%c3_97, %c0_98, %c0_99], %198 {strides = array<i32>} : memref<4x8x1xf32, #tpu.memory_space<vmem>>, vector<1x8x1xf32>,
      %c0_100 = arith.constant 0 : index
      %c96 = arith.constant 96 : index
      %199 = vector.load %arg14[%c0_100, %c96] : memref<8x128xf32, #tpu.memory_space<vmem>>, vector<8x32xf32>
      %200 = vector.broadcast %184 : vector<8x1xf32> to vector<8x32xf32>
      %201 = arith.mulf %200, %199 : vector<8x32xf32>
      %202 = arith.truncf %189 : vector<8x8xf32> to vector<8x8xbf16>
      %203 = vector.extract_strided_slice %47 {offsets = [0, 96], sizes = [8, 32], strides = [1, 1]} : vector<8x128xbf16> to vector<8x32xbf16>
      %cst_101 = arith.constant dense<0.000000e+00> : vector<8x32xf32>
      %204 = tpu.matmul %202, %203, %cst_101 {dimension_numbers = #tpu.dot_dimension_numbers<[1], [0], [0], [1], [0, 0, 1, 1], [], []>} : vector<8x8xbf16>, vector<8x32xbf16>, vector<8x32xf32> -> vector<8x32xf32>
      %205 = arith.addf %201, %204 : vector<8x32xf32>
      %c0_102 = arith.constant 0 : index
      %c96_103 = arith.constant 96 : index
      %206 = vector.load %arg14[%c0_102, %c96_103] : memref<8x128xf32, #tpu.memory_space<vmem>>, vector<8x32xf32>
      tpu.vector_store %arg14[%c0_102, %c96_103], %205 {strides = array<i32>} : memref<8x128xf32, #tpu.memory_space<vmem>>, vector<8x32xf32>,
      %c3_104 = arith.constant 3 : index
      %c0_105 = arith.constant 0 : index
      %c0_106 = arith.constant 0 : index
      %207 = vector.load %arg12[%c3_104, %c0_105, %c0_106] : memref<4x8x1xf32, #tpu.memory_space<vmem>>, vector<1x8x1xf32>
      %208 = vector.shape_cast %207 : vector<1x8x1xf32> to vector<8x1xf32>
      %209 = vector.shape_cast %182 : vector<8x1xf32> to vector<1x8x1xf32>
      tpu.vector_store %arg12[%c3_104, %c0_105, %c0_106], %209 {strides = array<i32>} : memref<4x8x1xf32, #tpu.memory_space<vmem>>, vector<1x8x1xf32>,
    } else {
    }
    %c1_i32_9 = arith.constant 1 : i32
    %27 = arith.cmpi eq, %arg2, %c1_i32_9 : i32
    %28 = arith.extui %27 : i1 to i32
    %c0_i32_10 = arith.constant 0 : i32
    %29 = arith.cmpi ne, %28, %c0_i32_10 : i32
    scf.if %29 {
      %c0 = arith.constant 0 : index
      %c0_11 = arith.constant 0 : index
      %c0_12 = arith.constant 0 : index
      %30 = vector.load %arg13[%c0, %c0_11, %c0_12] : memref<4x8x1xf32, #tpu.memory_space<vmem>>, vector<1x8x1xf32>
      %31 = vector.shape_cast %30 : vector<1x8x1xf32> to vector<8x1xf32>
      %32 = tpu.reciprocal %31 {approx = true} : vector<8x1xf32> -> vector<8x1xf32>
      %c0_13 = arith.constant 0 : index
      %c0_14 = arith.constant 0 : index
      %33 = vector.load %arg14[%c0_13, %c0_14] : memref<8x128xf32, #tpu.memory_space<vmem>>, vector<8x32xf32>
      %34 = vector.broadcast %32 : vector<8x1xf32> to vector<8x32xf32>
      %35 = arith.mulf %33, %34 : vector<8x32xf32>
      %c0_15 = arith.constant 0 : index
      %c0_16 = arith.constant 0 : index
      %36 = vector.load %arg14[%c0_15, %c0_16] : memref<8x128xf32, #tpu.memory_space<vmem>>, vector<8x32xf32>
      tpu.vector_store %arg14[%c0_15, %c0_16], %35 {strides = array<i32>} : memref<8x128xf32, #tpu.memory_space<vmem>>, vector<8x32xf32>,
      %c1 = arith.constant 1 : index
      %c0_17 = arith.constant 0 : index
      %c0_18 = arith.constant 0 : index
      %37 = vector.load %arg13[%c1, %c0_17, %c0_18] : memref<4x8x1xf32, #tpu.memory_space<vmem>>, vector<1x8x1xf32>
      %38 = vector.shape_cast %37 : vector<1x8x1xf32> to vector<8x1xf32>
      %39 = tpu.reciprocal %38 {approx = true} : vector<8x1xf32> -> vector<8x1xf32>
      %c0_19 = arith.constant 0 : index
      %c32 = arith.constant 32 : index
      %40 = vector.load %arg14[%c0_19, %c32] : memref<8x128xf32, #tpu.memory_space<vmem>>, vector<8x32xf32>
      %41 = vector.broadcast %39 : vector<8x1xf32> to vector<8x32xf32>
      %42 = arith.mulf %40, %41 : vector<8x32xf32>
      %c0_20 = arith.constant 0 : index
      %c32_21 = arith.constant 32 : index
      %43 = vector.load %arg14[%c0_20, %c32_21] : memref<8x128xf32, #tpu.memory_space<vmem>>, vector<8x32xf32>
      tpu.vector_store %arg14[%c0_20, %c32_21], %42 {strides = array<i32>} : memref<8x128xf32, #tpu.memory_space<vmem>>, vector<8x32xf32>,
      %c2 = arith.constant 2 : index
      %c0_22 = arith.constant 0 : index
      %c0_23 = arith.constant 0 : index
      %44 = vector.load %arg13[%c2, %c0_22, %c0_23] : memref<4x8x1xf32, #tpu.memory_space<vmem>>, vector<1x8x1xf32>
      %45 = vector.shape_cast %44 : vector<1x8x1xf32> to vector<8x1xf32>
      %46 = tpu.reciprocal %45 {approx = true} : vector<8x1xf32> -> vector<8x1xf32>
      %c0_24 = arith.constant 0 : index
      %c64 = arith.constant 64 : index
      %47 = vector.load %arg14[%c0_24, %c64] : memref<8x128xf32, #tpu.memory_space<vmem>>, vector<8x32xf32>
      %48 = vector.broadcast %46 : vector<8x1xf32> to vector<8x32xf32>
      %49 = arith.mulf %47, %48 : vector<8x32xf32>
      %c0_25 = arith.constant 0 : index
      %c64_26 = arith.constant 64 : index
      %50 = vector.load %arg14[%c0_25, %c64_26] : memref<8x128xf32, #tpu.memory_space<vmem>>, vector<8x32xf32>
      tpu.vector_store %arg14[%c0_25, %c64_26], %49 {strides = array<i32>} : memref<8x128xf32, #tpu.memory_space<vmem>>, vector<8x32xf32>,
      %c3 = arith.constant 3 : index
      %c0_27 = arith.constant 0 : index
      %c0_28 = arith.constant 0 : index
      %51 = vector.load %arg13[%c3, %c0_27, %c0_28] : memref<4x8x1xf32, #tpu.memory_space<vmem>>, vector<1x8x1xf32>
      %52 = vector.shape_cast %51 : vector<1x8x1xf32> to vector<8x1xf32>
      %53 = tpu.reciprocal %52 {approx = true} : vector<8x1xf32> -> vector<8x1xf32>
      %c0_29 = arith.constant 0 : index
      %c96 = arith.constant 96 : index
      %54 = vector.load %arg14[%c0_29, %c96] : memref<8x128xf32, #tpu.memory_space<vmem>>, vector<8x32xf32>
      %55 = vector.broadcast %53 : vector<8x1xf32> to vector<8x32xf32>
      %56 = arith.mulf %54, %55 : vector<8x32xf32>
      %c0_30 = arith.constant 0 : index
      %c96_31 = arith.constant 96 : index
      %57 = vector.load %arg14[%c0_30, %c96_31] : memref<8x128xf32, #tpu.memory_space<vmem>>, vector<8x32xf32>
      tpu.vector_store %arg14[%c0_30, %c96_31], %56 {strides = array<i32>} : memref<8x128xf32, #tpu.memory_space<vmem>>, vector<8x32xf32>,
      %c0_32 = arith.constant 0 : index
      %c0_33 = arith.constant 0 : index
      %58 = vector.load %arg14[%c0_32, %c0_33] : memref<8x128xf32, #tpu.memory_space<vmem>>, vector<8x128xf32>
      %59 = arith.truncf %58 : vector<8x128xf32> to vector<8x128xbf16>
      %c0_34 = arith.constant 0 : index
      %c0_35 = arith.constant 0 : index
      %60 = vector.load %arg7[%c0_34, %c0_35] : memref<128x128xbf16, #tpu.memory_space<vmem>>, vector<128x128xbf16>
      %cst = arith.constant dense<0.000000e+00> : vector<8x128xf32>
      %61 = tpu.matmul %59, %60, %cst {dimension_numbers = #tpu.dot_dimension_numbers<[1], [0], [0], [1], [0, 0, 1, 1], [], []>} : vector<8x128xbf16>, vector<128x128xbf16>, vector<8x128xf32> -> vector<8x128xf32>
      %c0_36 = arith.constant 0 : index
      %c0_37 = arith.constant 0 : index
      %c0_38 = arith.constant 0 : index
      %62 = vector.load %arg10[%c0_36, %c0_37, %c0_38] : memref<1x8x128xf32, #tpu.memory_space<vmem>>, vector<1x8x128xf32>
      %63 = vector.shape_cast %62 : vector<1x8x128xf32> to vector<8x128xf32>
      %64 = vector.shape_cast %61 : vector<8x128xf32> to vector<1x8x128xf32>
      tpu.vector_store %arg10[%c0_36, %c0_37, %c0_38], %64 {strides = array<i32>} : memref<1x8x128xf32, #tpu.memory_space<vmem>>, vector<1x8x128xf32>,
    } else {
    }
    return
  }
  func.func @transform_0(%arg0: i32, %arg1: i32, %arg2: i32) -> (i32, i32, i32) {
    %c0_i32 = arith.constant 0 : i32
    %c0_i32_0 = arith.constant 0 : i32
    return %arg0, %arg1, %c0_i32 : i32, i32, i32
  }
  func.func @transform_1(%arg0: i32, %arg1: i32, %arg2: i32) -> (i32, i32, i32) {
    %c1_i32 = arith.constant 1 : i32
    %0 = arith.subi %arg1, %c1_i32 : i32
    %1 = arith.addi %0, %arg2 : i32
    %c0_i32 = arith.constant 0 : i32
    %2 = arith.maxsi %1, %c0_i32 : i32
    %c0_i32_0 = arith.constant 0 : i32
    %c0_i32_1 = arith.constant 0 : i32
    return %arg0, %2, %c0_i32_0 : i32, i32, i32
  }
  func.func @transform_2(%arg0: i32, %arg1: i32, %arg2: i32) -> (i32, i32) {
    %c0_i32 = arith.constant 0 : i32
    %c0_i32_0 = arith.constant 0 : i32
    %c0_i32_1 = arith.constant 0 : i32
    return %c0_i32, %c0_i32_0 : i32, i32
  }
  func.func @transform_3(%arg0: i32, %arg1: i32, %arg2: i32) -> (i32, i32) {
    %c0_i32 = arith.constant 0 : i32
    %c0_i32_0 = arith.constant 0 : i32
    %c0_i32_1 = arith.constant 0 : i32
    return %c0_i32, %c0_i32_0 : i32, i32
  }
  func.func @transform_4(%arg0: i32, %arg1: i32, %arg2: i32) -> (i32, i32) {
    %c0_i32 = arith.constant 0 : i32
    %c0_i32_0 = arith.constant 0 : i32
    %c0_i32_1 = arith.constant 0 : i32
    return %c0_i32, %c0_i32_0 : i32, i32
  }
  func.func @transform_5(%arg0: i32, %arg1: i32, %arg2: i32) -> (i32, i32, i32) {
    %c0_i32 = arith.constant 0 : i32
    %c0_i32_0 = arith.constant 0 : i32
    %c0_i32_1 = arith.constant 0 : i32
    return %c0_i32, %arg1, %c0_i32_0 : i32, i32, i32
  }
  func.func @transform_6(%arg0: i32, %arg1: i32, %arg2: i32) -> (i32, i32, i32) {
    %c1_i32 = arith.constant 1 : i32
    %0 = arith.subi %arg1, %c1_i32 : i32
    %1 = arith.addi %0, %arg2 : i32
    %c0_i32 = arith.constant 0 : i32
    %2 = arith.maxsi %1, %c0_i32 : i32
    %c0_i32_0 = arith.constant 0 : i32
    %c0_i32_1 = arith.constant 0 : i32
    %c0_i32_2 = arith.constant 0 : i32
    return %c0_i32_0, %2, %c0_i32_1 : i32, i32, i32
  }
  func.func @transform_7(%arg0: i32, %arg1: i32, %arg2: i32) -> (i32, i32, i32) {
    %c0_i32 = arith.constant 0 : i32
    %c0_i32_0 = arith.constant 0 : i32
    return %arg0, %arg1, %c0_i32 : i32, i32, i32
  }
}

</mosaic_0001>

<bundles_post_ra>
// kernel: tpu_custom_call.1
= control target key start
LH: loop header
LB: loop body
LE: loop exit
PB: predicated region body
PF: predicated region fallthrough
CT: control target
= control target key end

     0   :  { %s3536_s0 = inlined_call_operand.hbm [shape: bf16[2,16,128], index: 0, kind: input, shape index: {}]   ;;  %s3537_s1 = inlined_call_operand.hbm [shape: bf16[2,16,128], index: 1, kind: input, shape index: {}]   ;;  %s3538_s2 = inlined_call_operand.hbm [shape: bf16[128,128], index: 2, kind: input, shape index: {}]   ;;  %s3539_s3 = inlined_call_operand.hbm [shape: bf16[128,256], index: 3, kind: input, shape index: {}]   ;;  %s3540_s4 = inlined_call_operand.hbm [shape: bf16[128,128], index: 4, kind: input, shape index: {}]   ;;  %s3541_s5 = inlined_call_operand.hbm [shape: f32[2,16,128], index: 5, kind: input, shape index: {}]   ;;  %s3542_s6 = inlined_call_operand.hbm [shape: f32[2,16,128], index: 6, kind: input, shape index: {}]   ;;  %s3543_s7 = inlined_call_operand.hbm [shape: f32[2,16,128], index: 7, kind: output, shape index: {}]  }
   0x1   :  { %3577 = sst [smem:[#allocation46_spill]] %s3536_s0 }
   0x2   :  { %3578 = sst [smem:[#allocation47_spill]] %s3537_s1 }
   0x3   :  { %3579 = sst [smem:[#allocation48_spill]] %s3538_s2 }
   0x4   :  { %3580 = sst [smem:[#allocation49_spill]] %s3539_s3 }
   0x5   :  { %3581 = sst [smem:[#allocation50_spill]] %s3540_s4 }
   0x6   :  { %3582 = sst [smem:[#allocation51_spill]] %s3541_s5 }
   0x7   :  { %3583 = sst [smem:[#allocation52_spill]] %s3542_s6 }
   0x8   :  { %3584 = sst [smem:[#allocation53_spill]] %s3543_s7 }
   0x9   :  { %12 = vsyncpa [#allocation7], 0 }
   0xa   :  { %14 = vsyncpa [#allocation7 + $0x1], 0 }
   0xb   :  { %15 = vsyncpa [#allocation10], 0 }
   0xc   :  { %17 = vsyncpa [#allocation10 + $0x1], 0 }
   0xd   :  { %18 = vsyncpa [#allocation13], 0 }
   0xe   :  { %19 = vsyncpa [#allocation16], 0 }
   0xf   :  { %21 = vsyncpa [#allocation16 + $0x1], 0 }
  0x10   :  { %22 = vsyncpa [#allocation8], 0 }
  0x11   :  { %24 = vsyncpa [#allocation8 + $0x1], 0  ;;  %s2741_s24 = smov 0   ;;  %s2743_s25 = smov 0  }
  0x12   :  { %s2745_s26 = smov 0   ;;  %s2747_s27 = smov 0  }
  0x13   :  { %s2749_s28 = smov 0   ;;  %s2751_s29 = smov 0  }
  0x14   :  { %s2753_s30 = smov 0   ;;  %s2755_s8 = smov 0  }
  0x15   :  { %s2757_s9 = smov 0   ;;  %s2759_s10 = smov 0  }
  0x16   :  { %s2761_s11 = smov 0   ;;  %s2763_s12 = smov 0  }
  0x17   :  { %s2765_s13 = smov 0   ;;  %s2767_s14 = smov 0  }
  0x18   :  { %s2769_s15 = smov 0   ;;  %s2771_s16 = smov 0  }
  0x19   :  { %s2773_s17 = smov 0   ;;  %s2775_s18 = smov 0  }
  0x1a   :  { %s2777_s19 = smov 0  }
  0x1b LB: > { %3585 = sst [smem:[#allocation26_spill]] %s2598_s24  ;;  %s2837_s20 = sadd.s32 4294967295, %s2670_s19   ;;  %s2670_s19 = sphi %s2777_s19, %s30_s19   ;;  %s2666_s18 = sphi %s2775_s18, %s3710_s18   ;;  %s2662_s17 = sphi %s2773_s17, %s3709_s17   ;;  %s2658_s16 = sphi %s2771_s16, %s3708_s16   ;;  %s2654_s15 = sphi %s2769_s15, %s3707_s15   ;;  %s2650_s14 = sphi %s2767_s14, %s3706_s14   ;;  %s2646_s13 = sphi %s2765_s13, %s3690_s13   ;;  %s2642_s12 = sphi %s2763_s12, %s3705_s12   ;;  %s2638_s11 = sphi %s2761_s11, %s3704_s11   ;;  %s2634_s10 = sphi %s2759_s10, %s3703_s10   ;;  %s2630_s9 = sphi %s2757_s9, %s3702_s9   ;;  %s2626_s8 = sphi %s2755_s8, %s3687_s8   ;;  %s2622_s30 = sphi %s2753_s30, %s3701_s30   ;;  %s2618_s29 = sphi %s2751_s29, %s3685_s29   ;;  %s2614_s28 = sphi %s2749_s28, %s3700_s28   ;;  %s2610_s27 = sphi %s2747_s27, %s3698_s27   ;;  %s2606_s26 = sphi %s2745_s26, %s3697_s26   ;;  %s2602_s25 = sphi %s2743_s25, %s3695_s25   ;;  %s2598_s24 = sphi %s2741_s24, %s3682_s24  }
  0x1c   : > { %3586 = sst [smem:[#allocation27_spill]] %s2602_s25  ;;  %p1755_p0 = scmp.ge.s32.totalorder %s2670_s19, 1 }
  0x1d   : > { %3587 = sst [smem:[#allocation28_spill]] %s2618_s29  ;;  %p3550_p1 = scmp.eq.s32.totalorder %s2837_s20, 0 }
  0x1e   : > { %3588 = sst [smem:[#allocation29_spill]] %s2622_s30  ;;  %p269_p2 = scmp.lt.s32.totalorder %s2670_s19, 9 }
  0x1f   : > { %3589 = sst [smem:[#allocation30_spill]] %s2626_s8  ;;  %s2672_s22 = smov [#allocation11]  }
  0x20   : > { %3590 = sst [smem:[#allocation31_spill]] %s2630_s9  ;;  %p2842_p3 = pnand %p1755_p0, %p269_p2 }
  0x21   : > { %3591 = sst [smem:[#allocation32_spill]] %s2642_s12  ;;  %s281_s23 = sshll.u32 %s2672_s22, 4  ;;  %s282_s23 = int_to_ptr.vmem [resolvable:$true] %s281_s23 }
  0x22   : > { %3592 = sst [smem:[#allocation33_spill]] %s2646_s13  ;;  %p1980_p4 = pneg %p2842_p3 }
  0x23   : > { %3593 = sst [smem:[#allocation34_spill]] %s2650_s14  ;;  %s3601_s2 = sld [smem:[#allocation48_spill]] }
  0x24   : > { %3594 = sst [smem:[#allocation35_spill]] %s2654_s15  ;;  %p2850_p5 = pnand %p1980_p4, %p3550_p1 }
  0x25   : > { %3595 = sst [smem:[#allocation36_spill]] %s2658_s16  ;;  %s2673_s15 = smov [#allocation12]  }
  0x26   : > { %3596 = sst [smem:[#allocation37_spill]] %s2662_s17  ;;  %s294_s13 = sshll.u32 %s2673_s15, 4  ;;  %s2854_s13 = int_to_ptr.vmem [resolvable:$true] %s294_s13 }
  0x27   : > { %3597 = sst [smem:[#allocation38_spill]] %s2666_s18  ;;  %p2864_p7 = pneg %p2850_p5 }
  0x28   : > { %s3598_s21 = scalar_select %p2842_p3, 1, 0 }
  0x29   : > { %s3600_s7 = scalar_select %p2850_p5, 1, 0 }
  0x2a   : > { %3599 = sst [smem:[#allocation39_spill]] %s3598_s21  ;;  %s2260_s30 = scalar_lea.hbm %s3601_s2, 1024 }
  0x2b   : > { %p2261_p6 = scmp.ne.s32.totalorder %s3601_s2, %s2260_s30  ;;  %p2267_p10 = scmp.lt.u32.totalorder %s2260_s30, %s3601_s2 }
  0x2d   : > { %p2263_p8 = pnand %p2864_p7, %p2261_p6 }
  0x2f   : > { %p2264_p9 = pneg %p2263_p8 }
  0x31   : > { %p2269_p11 = pnand %p2267_p10, %p2264_p9 }
  0x33   : > { %2272 = shalt.err (!%p2269_p11)
}
  0x34   : > { %s2273_s1 = scalar_lea.vmem %s282_s23, 1024  ;;  %p2281_p2 = scmp.lt.s32.totalorder %s282_s23, %s282_s23 }
  0x35   : > { %p2274_p12 = scmp.ne.s32.totalorder %s282_s23, %s2273_s1  ;;  %p2282_p4 = scmp.lt.s32.totalorder %s2273_s1, %s2273_s1 }
  0x37   : > { %p2276_p13 = pnand %p2274_p12, %p2864_p7  ;;  %p2283_p1 = por %p2282_p4, %p2281_p2 }
  0x39   : > { %p2277_p0 = pneg %p2276_p13 }
  0x3b   : > { %p2284_p3 = pnand %p2283_p1, %p2277_p0 }
  0x3d   : > { %2287 = shalt.err (!%p2284_p3)
}
  0x3e   : > { %s3555_s8 = smov 64   ;;  %s3556_s9 = smov 4  }
  0x3f   : > { %1983 = dma.hbm_to_vmem [thread:$0]  (!%p2850_p5), %s3601_s2, 1024, %s282_s23, [#allocation10], %s3555_s8, %s3555_s8, %s3556_s9  }
  0x40   : > { %s3603_s3 = sld [smem:[#allocation49_spill]] }
  0x46   : > { %s2288_s6 = scalar_lea.hbm %s3603_s3, 2048 }
  0x47   : > { %p2289_p1 = scmp.ne.s32.totalorder %s3603_s3, %s2288_s6  ;;  %p2295_p8 = scmp.lt.u32.totalorder %s2288_s6, %s3603_s3 }
  0x49   : > { %p2291_p3 = pnand %p2289_p1, %p2864_p7 }
  0x4b   : > { %p2292_p6 = pneg %p2291_p3 }
  0x4d   : > { %p2297_p9 = pnand %p2295_p8, %p2292_p6 }
  0x4f   : > { %2300 = shalt.err (!%p2297_p9)
}
  0x50   : > { %s2301_s23 = scalar_lea.vmem %s2854_s13, 2048  ;;  %p2309_p13 = scmp.lt.s32.totalorder %s2854_s13, %s2854_s13 }
  0x51   : > { %p2302_p10 = scmp.ne.s32.totalorder %s2854_s13, %s2301_s23  ;;  %p2310_p0 = scmp.lt.s32.totalorder %s2301_s23, %s2301_s23 }
  0x53   : > { %p2304_p11 = pnand %p2302_p10, %p2864_p7  ;;  %p2311_p2 = por %p2310_p0, %p2309_p13 }
  0x55   : > { %p2305_p12 = pneg %p2304_p11 }
  0x57   : > { %p2312_p4 = pnand %p2311_p2, %p2305_p12 }
  0x59   : > { %2315 = shalt.err (!%p2312_p4)
}
  0x5a   : > { %s3563_s0 = smov 128   ;;  %s3564_s6 = smov 8  }
  0x5b   : > { %1986 = dma.hbm_to_vmem [thread:$0]  (!%p2850_p5), %s3603_s3, 2048, %s2854_s13, [#allocation13], %s3563_s0, %s3563_s0, %s3564_s6  }
  0x5c   : > { %p3558_p1 = scmp.eq.s32.totalorder %s2670_s19, 0  ;;  %p190_p3 = scmp.ne.s32.totalorder %s2618_s29, %s2614_s28 }
  0x5d   : > { %p196_p6 = scmp.ne.s32.totalorder %s2614_s28, %s2610_s27  ;;  %p3557_p8 = scmp.lt.s32.totalorder %s2670_s19, 8 }
  0x5e   : > { %s3559_s14 = sand.u32 1, %s2670_s19   ;;  %p192_p9 = por %p190_p3, %p3558_p1 }
  0x5f   : > { %p3604_p10 = scmp.eq.s32.totalorder %s2837_s20, 0  ;;  %s367_s15 = sand.u32 1, %s2618_s29  }
  0x60   : > { %s1767_s1 = sshll.u32 %s367_s15, 4  ;;  %s1768_s23 = sshll.u32 %s2662_s17, 7 }
  0x61   : > { %p2921_p11 = por %p196_p6, %p3604_p10  ;;  %s3606_s5 = sld [smem:[#allocation51_spill]] }
  0x62   : > { %s369_s27 = scalar_lea.vmem [#allocation15], %s1767_s1  ;;  %p2934_p12 = pnand %p3557_p8, %p192_p9 }
  0x63   : > { %s3605_s21 = scalar_select %p2921_p11, 1, 0 }
  0x64   : > { %s375_s30 = sshll.u32 %s369_s27, 4  ;;  %s2942_s15 = scalar_lea.sflag [#allocation16], %s3559_s14  ;;  %s2938_s30 = int_to_ptr.vmem [resolvable:$true] %s375_s30 }
  0x65   : > { %p2318_p0 = pneg %p2934_p12 }
  0x67   : > { %s2930_s13 = scalar_lea.hbm %s3606_s5, %s1768_s23  ;;  %s2321_s25 = scalar_lea.hbm %s3606_s5, 512 }
  0x68   : > { %s2316_s23 = scalar_lea.hbm %s2930_s13, 256  ;;  %p2322_p3 = scmp.lt.u32.totalorder %s2930_s13, %s3606_s5 }
  0x69   : > { %p2317_p13 = scmp.ne.s32.totalorder %s2930_s13, %s2316_s23  ;;  %p2323_p6 = scmp.lt.u32.totalorder %s2321_s25, %s2316_s23 }
  0x6a   : > { %p2325_p10 = scmp.lt.u32.totalorder %s2316_s23, %s2930_s13 }
  0x6b   : > { %p2319_p2 = pnand %p2318_p0, %p2317_p13  ;;  %p2324_p9 = por %p2323_p6, %p2322_p3 }
  0x6d   : > { %p2320_p4 = pneg %p2319_p2  ;;  %p2326_p8 = por %p2325_p10, %p2324_p9 }
  0x6f   : > { %p2327_p1 = pnand %p2326_p8, %p2320_p4 }
  0x71   : > { %2330 = shalt.err (!%p2327_p1)
}
  0x72   : > { %s2331_s14 = scalar_lea.vmem %s2938_s30, 256  ;;  %s2678_s1 = smov [#allocation15]  }
  0x73   : > { %p2332_p13 = scmp.ne.s32.totalorder %s2938_s30, %s2331_s14  ;;  %s2336_s24 = sshll.u32 %s2678_s1, 4  ;;  %s2337_s24 = int_to_ptr.vmem [resolvable:$false] %s2336_s24 }
  0x74   : > { %s2338_s9 = scalar_lea.vmem %s2337_s24, 512  ;;  %p2339_p5 = scmp.lt.s32.totalorder %s2938_s30, %s2337_s24 }
  0x75   : > { %p2334_p2 = pnand %p2332_p13, %p2318_p0  ;;  %p2340_p3 = scmp.lt.s32.totalorder %s2338_s9, %s2331_s14 }
  0x77   : > { %p2335_p11 = pneg %p2334_p2  ;;  %p2341_p6 = por %p2340_p3, %p2339_p5 }
  0x79   : > { %p2342_p9 = pnand %p2341_p6, %p2335_p11 }
  0x7b   : > { %2345 = shalt.err (!%p2342_p9)
}
  0x7c   : > { %s3562_s23 = smov 256   ;;  %s2680_s25 = smov [#allocation14]  }
  0x7d   : > { %1999 = dma.hbm_to_vmem [thread:$0]  (!%p2934_p12), %s2930_s13, 256, %s2938_s30, %s2942_s15, %s3562_s23, %s3563_s0, %s3564_s6  }
  0x7e   : > { %s307_s27 = sshll.u32 %s2680_s25, 4  ;;  %s3608_s4 = sld [smem:[#allocation50_spill]]  ;;  %s308_s27 = int_to_ptr.vmem [resolvable:$true] %s307_s27 }
  0x84   : > { %s2346_s14 = scalar_lea.hbm %s3608_s4, 1024 }
  0x85   : > { %p2347_p5 = scmp.ne.s32.totalorder %s3608_s4, %s2346_s14  ;;  %p2353_p11 = scmp.lt.u32.totalorder %s2346_s14, %s3608_s4 }
  0x87   : > { %p2349_p1 = pnand %p2347_p5, %p2864_p7 }
  0x89   : > { %p2350_p8 = pneg %p2349_p1 }
  0x8b   : > { %p2355_p0 = pnand %p2353_p11, %p2350_p8 }
  0x8d   : > { %2358 = shalt.err (!%p2355_p0)
}
  0x8e   : > { %s2359_s30 = scalar_lea.vmem %s308_s27, 1024  ;;  %p2367_p13 = scmp.lt.s32.totalorder %s308_s27, %s308_s27 }
  0x8f   : > { %p2360_p12 = scmp.ne.s32.totalorder %s308_s27, %s2359_s30  ;;  %p2368_p2 = scmp.lt.s32.totalorder %s2359_s30, %s2359_s30 }
  0x91   : > { %p2362_p4 = pnand %p2360_p12, %p2864_p7  ;;  %p2369_p3 = por %p2368_p2, %p2367_p13 }
  0x93   : > { %p2363_p10 = pneg %p2362_p4 }
  0x95   : > { %p2370_p6 = pnand %p2369_p3, %p2363_p10 }
  0x97   : > { %2373 = shalt.err (!%p2370_p6)
}
  0x98   : > { %p3609_p9 = scmp.ne.s32.totalorder %s3600_s7, 0  ;;  %s3610_s2 = smov 4  }
  0x99   : > { %s3611_s13 = smov 64   ;;  %s42_s22 = sadd.s32 1, %s2658_s16 }
  0x9a   : > { %1989 = dma.hbm_to_vmem [thread:$0]  (!%p3609_p9), %s3608_s4, 1024, %s308_s27, [#allocation13], %s3611_s13, %s3611_s13, %s3610_s2  }
  0x9b   : > { %p43_p7 = scmp.ge.s32.totalorder %s42_s22, 2  ;;  %s45_s1 = sadd.s32 1, %s2662_s17 }
  0x9c   : > { %s49_s24 = sadd.s32 1, %s2666_s18  ;;  %s58_s14 = sadd.s32 1, %s2642_s12 }
  0x9d   : > { %s3712_s22 = smov (%p43_p7, %s42_s22), 0  ;;  %s3714_s1 = smov (!%p43_p7, %s45_s1), %s2662_s17 }
  0x9e   : > { %3612 = sst [smem:[#allocation40_spill]] %s3712_s22  ;;  %p65_p5 = scmp.ne.s32.totalorder %s2642_s12, %s2638_s11 }
  0x9f   : > { %p71_p1 = scmp.ne.s32.totalorder %s2638_s11, %s2634_s10  ;;  %p47_p8 = scmp.ge.s32.totalorder %s3714_s1, 2 }
  0xa0   : > { %s1751_s9 = sadd.s32 4294967295, %s2662_s17  ;;  %p3613_p11 = scmp.eq.s32.totalorder %s2670_s19, 0 }
  0xa1   : > { %p3615_p12 = scmp.eq.s32.totalorder %s2837_s20, 0  ;;  %s3716_s1 = smov (%p47_p8, %s3714_s1), 0 }
  0xa2   : > { %p3012_p0 = por %p3613_p11, %p65_p5  ;;  %3617 = sst [smem:[#allocation41_spill]] %s3716_s1 }
  0xa3   : > { %p3021_p4 = por %p3615_p12, %p71_p1  ;;  %s3718_s24 = smov (!%p47_p8, %s49_s24), %s2666_s18 }
  0xa4   : > { %s54_s30 = ssub.s32 %s2662_s17, %s3716_s1  ;;  %s82_s2 = sadd.s32 %s2658_s16, %s1751_s9 }
  0xa5   : > { %s3616_s8 = scalar_select %p3021_p4, 1, 0 }
  0xa6   : > { %s3618_s13 = sld [smem:[#allocation27_spill]]  ;;  %p51_p10 = scmp.ge.s32.totalorder %s3718_s24, 2 }
  0xa7   : > { %p83_p13 = scmp.gt.s32.totalorder %s82_s2, 0  ;;  %s1752_s3 = sadd.s32 4294967295, %s3716_s1 }
  0xa8   : > { %p181_p2 = scmp.eq.s32.totalorder %s54_s30, 0  ;;  %s3720_s24 = smov (%p51_p10, %s3718_s24), 0 }
  0xa9   : > { %3619 = sst [smem:[#allocation42_spill]] %s3720_s24  ;;  %s3620_s23 = smov %s3720_s24 }
  0xaa   : > { %s3722_s2 = smov (!%p83_p13, %s82_s2), 0  ;;  %s53_s25 = ssub.s32 %s2666_s18, %s3620_s23 }
  0xab   : > { %s3621_s0 = sld [smem:[#allocation26_spill]]  ;;  %s86_s9 = sadd.s32 %s1752_s3, %s3712_s22 }
  0xac   : > { %s55_s6 = sor.u32 %s54_s30, %s53_s25  ;;  %p87_p3 = scmp.gt.s32.totalorder %s86_s9, 0 }
  0xad   : > { %p56_p6 = scmp.eq.s32.totalorder %s55_s6, 0  ;;  %s217_s7 = sadd.s32 1, %s2606_s26 }
  0xae   : > { %s3724_s9 = smov (!%p87_p3, %s86_s9), 0  ;;  %p224_p9 = scmp.ne.s32.totalorder %s2606_s26, %s3618_s13 }
  0xaf   : > { %s3041_s24 = scalar_select %p56_p6, %s2642_s12, %s58_s14  }
  0xb0   : > { %s90_s4 = ssub.s32 %s3722_s2, %s3724_s9  ;;  %p3052_p12 = por %p224_p9, %p3613_p11 }
  0xb1   : > { %3622 = sst [smem:[#allocation43_spill]] %s3041_s24  ;;  %s91_s3 = sor.u32 %s90_s4, %s53_s25 }
  0xb2   : > { %p215_p7 = scmp.eq.s32.totalorder %s90_s4, 0  ;;  %p3046_p8 = scmp.eq.s32.totalorder %s91_s3, 0 }
  0xb3   : > { %s3624_s6 = scalar_select %p3052_p12, 1, 0 }
  0xb4   : > { %s3625_s23 = sadd.s32 1, %s2618_s29  ;;  %p230_p10 = scmp.ne.s32.totalorder %s3618_s13, %s3621_s0 }
  0xb5   : > { %s3060_s1 = scalar_select %p181_p2, %s2618_s29, %s3625_s23  }
  0xb6   : > { %s3063_s14 = scalar_select %p215_p7, %s2606_s26, %s217_s7  }
  0xb7   : > { %3626 = sst [smem:[#allocation44_spill]] %s3060_s1  ;;  %p256_p13 = scmp.eq.s32.totalorder %s2837_s20, 7 }
  0xb8   : > { %3627 = sst [smem:[#allocation45_spill]] %s3063_s14  ;;  %s3628_s4 = sadd.s32 4294967294, %s2670_s19  }
  0xb9   : > { %p262_p3 = scmp.eq.s32.totalorder %s3628_s4, 7  ;;  %s321_s25 = sand.u32 1, %s2642_s12  }
  0xba   : > { %p3629_p6 = scmp.eq.s32.totalorder %s2837_s20, 0  ;;  %p3080_p11 = por %p256_p13, %p65_p5 }
  0xbb   : > { %p3087_p2 = por %p262_p3, %p71_p1  ;;  %s1760_s0 = sshll.u32 %s321_s25, 2 }
  0xbc   : > { %p3073_p9 = por %p230_p10, %p3629_p6  ;;  %s1761_s30 = sshll.u32 %s2666_s18, 1 }
  0xbd   : > { %s3631_s23 = scalar_select %p3080_p11, 1, 0 }
  0xbe   : > { %s3630_s9 = scalar_select %p3073_p9, 1, 0 }
  0xbf   : > { %s3632_s7 = scalar_select %p3087_p2, 1, 0 }
  0xc0   : > { %s330_s13 = sadd.s32 %s2662_s17, %s1761_s30  ;;  %s325_s4 = scalar_lea.vmem [#allocation6], %s1760_s0 }
  0xc1   : > { %3633 = sst [smem:[#allocation26_spill]] %s3632_s7  ;;  %s1762_s3 = sshll.u32 %s330_s13, 6 }
  0xc2   : > { %s334_s22 = sshll.u32 %s325_s4, 4  ;;  %s3634_s1 = sld [smem:[#allocation46_spill]]  ;;  %s3098_s22 = int_to_ptr.vmem [resolvable:$true] %s334_s22 }
  0xc3   : > { %p3635_p5 = scmp.lt.s32.totalorder %s2670_s19, 8  ;;  %s3109_s0 = sadd.s32 %s1761_s30, %s3722_s2 }
  0xc4   : > { %s1771_s13 = sshll.u32 %s3722_s2, 7  ;;  %s322_s18 = scalar_lea.sflag [#allocation7], %s321_s25 }
  0xc5   : > { %p3104_p1 = pnand %p3635_p5, %p3012_p0 }
  0xc7   : > { %p2376_p10 = pneg %p3104_p1 }
  0xc8   : > { %s3096_s29 = scalar_lea.hbm %s3634_s1, %s1762_s3  ;;  %s3637_s3 = sld [smem:[#allocation52_spill]] }
  0xc9   : > { %s2374_s17 = scalar_lea.hbm %s3096_s29, 64  ;;  %s2379_s30 = scalar_lea.hbm %s3634_s1, 256 }
  0xca   : > { %p2375_p7 = scmp.ne.s32.totalorder %s3096_s29, %s2374_s17  ;;  %p2380_p3 = scmp.lt.u32.totalorder %s3096_s29, %s3634_s1 }
  0xcb   : > { %p2381_p6 = scmp.lt.u32.totalorder %s2379_s30, %s2374_s17  ;;  %p2383_p2 = scmp.lt.u32.totalorder %s2374_s17, %s3096_s29 }
  0xcc   : > { %p2377_p0 = pnand %p2376_p10, %p2375_p7 }
  0xcd   : > { %p2382_p5 = por %p2381_p6, %p2380_p3 }
  0xce   : > { %s3115_s4 = scalar_lea.hbm %s3637_s3, %s1771_s13  ;;  %p2378_p13 = pneg %p2377_p0 }
  0xcf   : > { %p2384_p11 = por %p2383_p2, %p2382_p5 }
  0xd1   : > { %p2385_p9 = pnand %p2384_p11, %p2378_p13 }
  0xd3   : > { %2388 = shalt.err (!%p2385_p9)
}
  0xd4   : > { %s2389_s25 = scalar_lea.vmem %s3098_s22, 64  ;;  %s2681_s14 = smov [#allocation6]  }
  0xd5   : > { %p2390_p7 = scmp.ne.s32.totalorder %s3098_s22, %s2389_s25  ;;  %s2394_s13 = sshll.u32 %s2681_s14, 4  ;;  %s2395_s13 = int_to_ptr.vmem [resolvable:$false] %s2394_s13 }
  0xd6   : > { %s2396_s7 = scalar_lea.vmem %s2395_s13, 128  ;;  %p2397_p12 = scmp.lt.s32.totalorder %s3098_s22, %s2395_s13 }
  0xd7   : > { %p2392_p0 = pnand %p2390_p7, %p2376_p10  ;;  %p2398_p3 = scmp.lt.s32.totalorder %s2396_s7, %s2389_s25 }
  0xd9   : > { %p2393_p4 = pneg %p2392_p0  ;;  %p2399_p6 = por %p2398_p3, %p2397_p12 }
  0xdb   : > { %p2400_p2 = pnand %p2399_p6, %p2393_p4 }
  0xdd   : > { %2403 = shalt.err (!%p2400_p2)
}
  0xde   : > { %s3638_s17 = sld [smem:[#allocation31_spill]]  ;;  %s3639_s16 = sld [smem:[#allocation30_spill]] }
  0xdf   : > { %s3640_s24 = sld [smem:[#allocation29_spill]]  ;;  %p3641_p9 = scmp.eq.s32.totalorder %s2670_s19, 0 }
  0xe0   : > { %1993 = dma.hbm_to_vmem [thread:$0]  (!%p3104_p1), %s3096_s29, 64, %s3098_s22, %s322_s18  }
  0xe1   : > { %p3642_p10 = scmp.eq.s32.totalorder %s2837_s20, 0  ;;  %s1766_s14 = sshll.u32 %s3109_s0, 6 }
  0xe2   : > { %s3644_s29 = sld [smem:[#allocation47_spill]]  ;;  %s387_s0 = sand.u32 1, %s2606_s26  }
  0xe4   : > { %s94_s27 = sadd.s32 1, %s3638_s17  ;;  %p101_p4 = scmp.ne.s32.totalorder %s3638_s17, %s3639_s16 }
  0xe5   : > { %s3146_s12 = scalar_select %p3046_p8, %s3638_s17, %s94_s27  }
  0xe6   : > { %p107_p12 = scmp.ne.s32.totalorder %s3639_s16, %s3640_s24  ;;  %s343_s30 = sand.u32 1, %s3638_s17  }
  0xe7   : > { %p103_p11 = por %p101_p4, %p3641_p9  ;;  %s1763_s25 = sshll.u32 %s343_s30, 2 }
  0xe8   : > { %p3157_p13 = por %p107_p12, %p3642_p10  ;;  %s3645_s22 = smov %s3644_s29 }
  0xe9   : > { %s3165_s18 = scalar_lea.hbm %s3644_s29, %s1766_s14  ;;  %s345_s5 = scalar_lea.vmem [#allocation9], %s1763_s25 }
  0xea   : > { %s358_s17 = sshll.u32 %s345_s5, 4  ;;  %p3646_p8 = scmp.lt.s32.totalorder %s2670_s19, 8  ;;  %s3173_s17 = int_to_ptr.vmem [resolvable:$true] %s358_s17 }
  0xeb   : > { %s3176_s24 = sshll.u32 %s387_s0, 4  ;;  %s3648_s27 = sand.u32 1, %s2670_s19  }
  0xec   : > { %p3169_p1 = pnand %p3646_p8, %p103_p11  ;;  %s342_s30 = scalar_lea.sflag [#allocation10], %s3648_s27 }
  0xed   : > { %s2404_s14 = scalar_lea.hbm %s3165_s18, 64  ;;  %s2409_s7 = scalar_lea.hbm %s3645_s22, 256 }
  0xee   : > { %p2405_p5 = scmp.ne.s32.totalorder %s3165_s18, %s2404_s14  ;;  %p2406_p7 = pneg %p3169_p1 }
  0xef   : > { %p2410_p6 = scmp.lt.u32.totalorder %s3165_s18, %s3645_s22  ;;  %p2411_p2 = scmp.lt.u32.totalorder %s2409_s7, %s2404_s14 }
  0xf0   : > { %p2407_p0 = pnand %p2406_p7, %p2405_p5  ;;  %p2413_p12 = scmp.lt.u32.totalorder %s2404_s14, %s3165_s18 }
  0xf1   : > { %p2412_p4 = por %p2411_p2, %p2410_p6 }
  0xf2   : > { %p2408_p3 = pneg %p2407_p0 }
  0xf3   : > { %p2414_p9 = por %p2413_p12, %p2412_p4 }
  0xf5   : > { %p2415_p11 = pnand %p2414_p9, %p2408_p3 }
  0xf7   : > { %2418 = shalt.err (!%p2415_p11)
}
  0xf8   : > { %s2419_s0 = scalar_lea.vmem %s3173_s17, 64  ;;  %s2682_s27 = smov [#allocation9]  }
  0xf9   : > { %p2420_p10 = scmp.ne.s32.totalorder %s3173_s17, %s2419_s0  ;;  %s2424_s25 = sshll.u32 %s2682_s27, 4  ;;  %s2425_s25 = int_to_ptr.vmem [resolvable:$false] %s2424_s25 }
  0xfa   : > { %s2426_s13 = scalar_lea.vmem %s2425_s25, 128  ;;  %p2427_p0 = scmp.lt.s32.totalorder %s3173_s17, %s2425_s25 }
  0xfb   : > { %p2422_p8 = pnand %p2420_p10, %p2406_p7  ;;  %p2428_p6 = scmp.lt.s32.totalorder %s2426_s13, %s2419_s0 }
  0xfd   : > { %p2423_p5 = pneg %p2422_p8  ;;  %p2429_p2 = por %p2428_p6, %p2427_p0 }
  0xff   : > { %p2430_p4 = pnand %p2429_p2, %p2423_p5 }
 0x101   : > { %2433 = shalt.err (!%p2430_p4)
}
 0x102   : > { %1996 = dma.hbm_to_vmem [thread:$0]  (!%p3169_p1), %s3165_s18, 64, %s3173_s17, %s342_s30  }
 0x103   : > { %p3649_p7 = scmp.ne.s32.totalorder %s3624_s6, 0  ;;  %p3650_p3 = scmp.lt.s32.totalorder %s2670_s19, 8 }
 0x104   : > { %s389_s7 = scalar_lea.vmem [#allocation17], %s3176_s24  ;;  %s2434_s29 = scalar_lea.hbm %s3115_s4, 256 }
 0x105   : > { %p3209_p12 = pnand %p3650_p3, %p3649_p7  ;;  %s399_s16 = sshll.u32 %s389_s7, 4  ;;  %s3214_s16 = int_to_ptr.vmem [resolvable:$true] %s399_s16 }
 0x106   : > { %p2435_p9 = scmp.ne.s32.totalorder %s3115_s4, %s2434_s29  ;;  %s2439_s17 = scalar_lea.hbm %s3637_s3, 512 }
 0x107   : > { %p2436_p11 = pneg %p3209_p12  ;;  %p2440_p8 = scmp.lt.u32.totalorder %s3115_s4, %s3637_s3 }
 0x108   : > { %p2441_p5 = scmp.lt.u32.totalorder %s2439_s17, %s2434_s29  ;;  %p2443_p6 = scmp.lt.u32.totalorder %s2434_s29, %s3115_s4 }
 0x109   : > { %p2437_p10 = pnand %p2436_p11, %p2435_p9 }
 0x10a   : > { %p2442_p0 = por %p2441_p5, %p2440_p8 }
 0x10b   : > { %p2438_p1 = pneg %p2437_p10 }
 0x10c   : > { %p2444_p2 = por %p2443_p6, %p2442_p0 }
 0x10e   : > { %p2445_p4 = pnand %p2444_p2, %p2438_p1 }
 0x110   : > { %2448 = shalt.err (!%p2445_p4)
}
 0x111   : > { %s2449_s24 = scalar_lea.vmem %s3214_s16, 256  ;;  %s2683_s0 = smov [#allocation17]  }
 0x112   : > { %p2450_p7 = scmp.ne.s32.totalorder %s3214_s16, %s2449_s24  ;;  %s2454_s27 = sshll.u32 %s2683_s0, 4  ;;  %s2455_s27 = int_to_ptr.vmem [resolvable:$false] %s2454_s27 }
 0x113   : > { %s2456_s25 = scalar_lea.vmem %s2455_s27, 512  ;;  %p2457_p10 = scmp.lt.s32.totalorder %s3214_s16, %s2455_s27 }
 0x114   : > { %p2452_p3 = pnand %p2450_p7, %p2436_p11  ;;  %p2458_p8 = scmp.lt.s32.totalorder %s2456_s25, %s2449_s24 }
 0x116   : > { %p2453_p9 = pneg %p2452_p3  ;;  %p2459_p5 = por %p2458_p8, %p2457_p10 }
 0x118   : > { %p2460_p0 = pnand %p2459_p5, %p2453_p9 }
 0x11a   : > { %2463 = shalt.err (!%p2460_p0)
}
 0x11b   : > { %s3652_s13 = smov 8   ;;  %s3653_s7 = smov 128  }
 0x11c   : > { %s3654_s29 = smov 256   ;;  %s3655_s6 = sld [smem:[#allocation39_spill]] }
 0x11d   : > { %2002 = dma.hbm_to_vmem [thread:$0]  (!%p3209_p12), %s3115_s4, 256, %s3214_s16, %s2942_s15, %s3654_s29, %s3653_s7, %s3652_s13  }
 0x122   : > { %p3656_p11 = scmp.ne.s32.totalorder %s3655_s6, 0 }
 0x123   : > { %s3248_s18 = sand.u32 (!%p3656_p11), 1, %s2638_s11   ;;  %p3657_p1 = scmp.ne.s32.totalorder (!%p3656_p11), %s3616_s8, 0 }
 0x124   : > { %411 = sbr.rel (%p3656_p11) target bundleno = 2936 (0xb78), region = 48  ;;  %s1773_s17 = sshll.u32 (!%p3656_p11), %s3248_s18, 2 }
 0x125   : > { %s414_s30 = scalar_lea.sflag (!%p3656_p11), [#allocation7], %s3248_s18  ;;  %s3252_s5 = scalar_lea.vmem (!%p3656_p11), [#allocation6], %s1773_s17 }
 0x12b   : > { %2569 = dma.done.wait (%p3657_p1), %s414_s30, 64  }
 0x12c   : > { %2571 = vsyncadd (%p3657_p1), %s414_s30, 4294967232  ;;  %s3658_s15 = sld [smem:[#allocation30_spill]]  ;;  %s422_s4 = sand.u32 1, %s2837_s20  }
 0x12d   : > { %s423_s24 = scalar_lea.sflag [#allocation10], %s422_s4 }
 0x132   : > { %s424_s14 = sand.u32 1, %s3658_s15  }
 0x133   : > { %s3260_s16 = sshll.u32 %s424_s14, 2 }
 0x134   : > { %s426_s0 = scalar_lea.vmem [#allocation9], %s3260_s16 }
 0x135   : > { %2573 = dma.done.wait (%p3157_p13), %s423_s24, 64  }
 0x136   : > { %2575 = vsyncadd (%p3157_p13), %s423_s24, 4294967232  ;;  %p3659_p12 = scmp.eq.s32.totalorder %s2837_s20, 0 }
 0x138   : > { %2577 = dma.done.wait (%p3659_p12), [#allocation10], 1024   ;;  %p3660_p6 = pmov %p3659_p12 }
 0x13a   : > { %2579 = vsyncadd (%p3660_p6), [#allocation10], 4294966272  ;;  %p3661_p2 = pmov %p3660_p6 }
 0x13c   : > { %2581 = dma.done.wait (%p3661_p2), [#allocation13], 3072   ;;  %p3662_p4 = pmov %p3661_p2 }
 0x13d   : > { %s445_s8 = sand.u32 1, %s2614_s28   ;;  %s444_s2 = scalar_lea.sflag [#allocation16], %s422_s4 }
 0x13e   : > { %2583 = vsyncadd (%p3662_p4), [#allocation13], 4294964224  ;;  %s3276_s27 = sshll.u32 %s445_s8, 4  ;;  %p3663_p13 = scmp.ne.s32.totalorder %s3605_s21, 0 }
 0x13f   : > { %s447_s25 = scalar_lea.vmem [#allocation15], %s3276_s27 }
 0x140   : > { %2585 = dma.done.wait (%p3663_p13), %s444_s2, 256  }
 0x141   : > { %2587 = vsyncadd (%p3663_p13), %s444_s2, 4294967040  ;;  %s3664_s13 = sld [smem:[#allocation27_spill]]  ;;  %p3665_p7 = scmp.ne.s32.totalorder %s3630_s9, 0 }
 0x147   : > { %s454_s7 = sand.u32 1, %s3664_s13  }
 0x148   : > { %s3284_s29 = sshll.u32 %s454_s7, 4 }
 0x149   : > { %s456_s20 = scalar_lea.vmem [#allocation17], %s3284_s29 }
 0x14a   : > { %2589 = dma.done.wait (%p3665_p7), %s444_s2, 256  }
 0x14b   : > { %2591 = vsyncadd (%p3665_p7), %s444_s2, 4294967040  ;;  %s3666_s6 = sld [smem:[#allocation34_spill]]  ;;  %s3667_s17 = sld [smem:[#allocation33_spill]]  ;;  %v513_v0 = vlaneseq }
 0x14c   : > { %s1780_s30 = sshll.u32 %s3248_s18, 3 }
 0x14d   : > { %v3297_v1 = vand.u32 127, %v513_v0  ;;  %s3304_s4 = scalar_lea.vmem [#allocation18], %s1780_s30 }
 0x14f   : > { %v519_v2 = vand.u32 1, %v3297_v1 }
 0x151   : > { %s1781_s15 = sadd.s32 4294967295, %s3666_s6  ;;  %vm3300_vm0 = vcmp.eq.s32.totalorder %v519_v2, 0  ;;  %p1782_p3 = scmp.ne.s32.totalorder %s3667_s17, 0 }
 0x152   : > { %s3294_s21 = sadd.s32 %s3667_s17, %s1781_s15  ;;  %vm650_vm1 = vcmask (!%p1782_p3), 7168   ;;  %v2684_v4 = vmov (!%p1782_p3), 0.0   ;;  %v2685_v5 = vmov (!%p1782_p3), -1e+30   ;;  %v2191_v6 = vld [vmem:[#allocation11] sm:$0xff] (!%p1782_p3)   ;;  %vm2686_vm2 = vmmov (!%p1782_p3), 0  }
 0x153   : > { %531 = sbr.rel (%p1782_p3) target bundleno = 710 (0x2c6), region = 80  ;;  %1870 = vmatprep.subr.bf16.mxu0 (!%p1782_p3), %v2684_v4  ;;  %651 = vst.msk [vmem:[#allocation3] sm:$0xff] (!%p1782_p3), %vm650_vm1, %v2685_v5  ;;  %652 = vst.msk [vmem:[#allocation3 + $0x8] sm:$0xff] (!%p1782_p3), %vm650_vm1, %v2685_v5  ;;  %1886 = vmatprep.mubr.msk.bf16.mxu0 (!%p1782_p3), %vm2686_vm2, %v2684_v4  ;;  %v2192_v7 = vld [vmem:[#allocation11 + $0x8] sm:$0xff] (!%p1782_p3)   ;;  %v2193_v8 = vld [vmem:[#allocation11 + $0x10] sm:$0xff] (!%p1782_p3)   ;;  %s2687_s9 = smov (!%p1782_p3), 127  }
 0x154   : > { %653 = vst.msk [vmem:[#allocation3 + $0x10] sm:$0xff] (!%p1782_p3), %vm650_vm1, %v2685_v5  ;;  %654 = vst.msk [vmem:[#allocation3 + $0x18] sm:$0xff] (!%p1782_p3), %vm650_vm1, %v2685_v5  ;;  %1871 = vmatpush3.bf16.msra.mxu0 (!%p1782_p3), %v2191_v6  ;;  %v2194_v9 = vld [vmem:[#allocation11 + $0x18] sm:$0xff] (!%p1782_p3)   ;;  %v2195_v10 = vld [vmem:[#allocation11 + $0x20] sm:$0xff] (!%p1782_p3)   ;;  %s2688_s14 = smov (!%p1782_p3), 1  }
 0x155   : > { %655 = vst.msk [vmem:[#allocation4] sm:$0xff] (!%p1782_p3), %vm650_vm1, %v2684_v4  ;;  %656 = vst.msk [vmem:[#allocation4 + $0x8] sm:$0xff] (!%p1782_p3), %vm650_vm1, %v2684_v4  ;;  %1872 = vmatprep.subr.bf16.mxu0 (!%p1782_p3), %v2684_v4  ;;  %v2196_v11 = vld [vmem:[#allocation11 + $0x28] sm:$0xff] (!%p1782_p3)   ;;  %v2197_v12 = vld [vmem:[#allocation11 + $0x30] sm:$0xff] (!%p1782_p3)  }
 0x156   : > { %657 = vst.msk [vmem:[#allocation4 + $0x10] sm:$0xff] (!%p1782_p3), %vm650_vm1, %v2684_v4  ;;  %658 = vst.msk [vmem:[#allocation4 + $0x18] sm:$0xff] (!%p1782_p3), %vm650_vm1, %v2684_v4  ;;  %v2198_v13 = vld [vmem:[#allocation11 + $0x38] sm:$0xff] (!%p1782_p3)   ;;  %v532_v14 = vld [vmem:[%s3252_s5] sm:$0xf] (!%p1782_p3) }
 0x157   : > { %659 = vst [vmem:[#allocation5] sm:$0xff] (!%p1782_p3), %v2684_v4  ;;  %v637_v20 = vld [vmem:[%s447_s25] sm:$0xff] (!%p1782_p3)  ;;  %v1791_v21 = vld [vmem:[%s447_s25 + $0x8] sm:$0xff] (!%p1782_p3) }
 0x158   : > { %1873 = vmatpush3.bf16.msra.mxu0 (!%p1782_p3), %v2192_v7 }
 0x159   : > { %1874 = vmatprep.subr.bf16.mxu0 (!%p1782_p3), %v2684_v4 }
 0x15c   : > { %1875 = vmatpush3.bf16.msra.mxu0 %v2193_v8 }
 0x15d   : > { %1876 = vmatprep.subr.bf16.mxu0 %v2684_v4 }
 0x160   : > { %1877 = vmatpush3.bf16.msra.mxu0 %v2194_v9 }
 0x161   : > { %1878 = vmatprep.subr.bf16.mxu0 %v2684_v4 }
 0x164   : > { %1879 = vmatpush3.bf16.msra.mxu0 %v2195_v10 }
 0x165   : > { %1880 = vmatprep.subr.bf16.mxu0 %v2684_v4 }
 0x168   : > { %1881 = vmatpush3.bf16.msra.mxu0 %v2196_v11 }
 0x169   : > { %1882 = vmatprep.subr.bf16.mxu0 %v2684_v4 }
 0x16c   : > { %1883 = vmatpush3.bf16.msra.mxu0 %v2197_v12 }
 0x16d   : > { %1884 = vmatprep.subr.bf16.mxu0 %v2684_v4 }
 0x170   : > { %1885 = vmatpush3.bf16.msra.mxu0 %v2198_v13 }
 0x173   : > { %1887 = vmatmul.mubr.bf16.vlgmr.msra.gmra.mrb[0].mxu0 %v532_v14 }
 0x246   : > { %v631_v15 = vpop.f32.mrb[0].mxu0 }
 0x247   : > { %640 = vrot.lane.b32.xlu0 %v631_v15, %s2687_s9  ;;  %v1888_v16 = vpop.f32.mrb[1].mxu0  ;;  %v644_v24 = vmul.f32 %v637_v20, %v631_v15 }
 0x248   : > { %v634_v17 = vpop.f32.mrb[2].mxu0 }
 0x249   : > { %v1889_v18 = vpop.f32.mrb[3].mxu0 }
 0x24b   : > { %642 = vrot.lane.b32.xlu0 %v631_v15, %s2688_s14 }
 0x2b9   : > { %v641_v19 = vpop.permute.xlu0 %640 }
 0x2bd   : > { %v643_v22 = vpop.permute.xlu0 %642 }
 0x2be   : > { %v645_v23 = vsel %vm3300_vm0, %v641_v19, %v643_v22 }
 0x2bf   : > { %v646_v25 = vmul.f32 %v1791_v21, %v645_v23 }
 0x2c1   : > { %v647_v26 = vadd.f32 %v646_v25, %v644_v24 }
 0x2c3   : > { %v648_v27 = vpack.c.bf16 %v647_v26, %v647_v26 }
 0x2c5   : > { %649 = vst [vmem:[#allocation2] sm:$0xf] %v648_v27 }
 0x2c6 PF: > { %p1792_p9 = scmp.lt.s32.totalorder %s3294_s21, 0 }
 0x2c7   : > { %v2201_v28 = vld [vmem:[#allocation12 + $0x4] ss:$8 sps:$4 sm:$0xff] (!%p1792_p9)   ;;  %v2203_v29 = vld [vmem:[#allocation12] ss:$8 sps:$4 sm:$0xff] (!%p1792_p9)   ;;  %v2689_v30 = vmov (!%p1792_p9), 0   ;;  %v2690_v46 = vmov (!%p1792_p9), 0.0  }
 0x2c8   : > { %663 = sbr.rel (%p1792_p9) target bundleno = 2503 (0x9c7), region = 84  ;;  %793 = vmatprep.mubr.bf16.mxu0 (!%p1792_p9), %v2689_v30  ;;  %2199 = vset.pattern.permute.xlu1 (!%p1792_p9), %v2689_v30  ;;  %v2204_v31 = vld [vmem:[#allocation12 + $0x14] ss:$8 sps:$4 sm:$0xff] (!%p1792_p9)   ;;  %v2206_v32 = vld [vmem:[#allocation12 + $0x10] ss:$8 sps:$4 sm:$0xff] (!%p1792_p9)   ;;  %s2691_s5 = smov (!%p1792_p9), 127  }
 0x2c9   : > { %761 = vmatprep.subr.bf16.mxu0 (!%p1792_p9), %v2201_v28  ;;  %2200 = vset.pattern.permute.xlu0 (!%p1792_p9), %v2689_v30  ;;  %v2207_v33 = vld [vmem:[#allocation12 + $0x24] ss:$8 sps:$4 sm:$0xff] (!%p1792_p9)   ;;  %v2209_v34 = vld [vmem:[#allocation12 + $0x20] ss:$8 sps:$4 sm:$0xff] (!%p1792_p9)   ;;  %v2210_v35 = vld [vmem:[#allocation12 + $0x34] ss:$8 sps:$4 sm:$0xff] (!%p1792_p9)  }
 0x2ca   : > { %762 = vmatpush1.bf16.msra.mxu0 (!%p1792_p9), %v2203_v29  ;;  %v2212_v36 = vld [vmem:[#allocation12 + $0x30] ss:$8 sps:$4 sm:$0xff] (!%p1792_p9)   ;;  %v2213_v37 = vld [vmem:[#allocation12 + $0x44] ss:$8 sps:$4 sm:$0xff] (!%p1792_p9)   ;;  %v2215_v38 = vld [vmem:[#allocation12 + $0x40] ss:$8 sps:$4 sm:$0xff] (!%p1792_p9)   ;;  %1890 = vmatprep.subr.bf16.mxu1 (!%p1792_p9), %v2690_v46 }
 0x2cb   : > { %763 = vmatprep.subr.bf16.mxu0 (!%p1792_p9), %v2204_v31  ;;  %v2216_v39 = vld [vmem:[#allocation12 + $0x54] ss:$8 sps:$4 sm:$0xff] (!%p1792_p9)   ;;  %v2218_v40 = vld [vmem:[#allocation12 + $0x50] ss:$8 sps:$4 sm:$0xff] (!%p1792_p9)   ;;  %v2219_v41 = vld [vmem:[#allocation12 + $0x64] ss:$8 sps:$4 sm:$0xff] (!%p1792_p9)  }
 0x2cc   : > { %v2221_v42 = vld [vmem:[#allocation12 + $0x60] ss:$8 sps:$4 sm:$0xff] (!%p1792_p9)   ;;  %v2222_v43 = vld [vmem:[#allocation12 + $0x74] ss:$8 sps:$4 sm:$0xff] (!%p1792_p9)   ;;  %v2224_v44 = vld [vmem:[#allocation12 + $0x70] ss:$8 sps:$4 sm:$0xff] (!%p1792_p9)  }
 0x2cd   : > { %v664_v45 = vld [vmem:[%s426_s0] sm:$0xf] (!%p1792_p9)  ;;  %vm2692_vm3 = vmmov (!%p1792_p9), 0   ;;  %s2693_s16 = smov (!%p1792_p9), 1   ;;  %v802_v52 = vld [vmem:[%s456_s20] sm:$0xff] (!%p1792_p9)  ;;  %vm828_vm4 = vcmask (!%p1792_p9), 261120  }
 0x2ce   : > { %764 = vmatpush1.bf16.msra.mxu0 (!%p1792_p9), %v2206_v32  ;;  %1892 = vmatprep.mubr.msk.bf16.mxu1 (!%p1792_p9), %vm2692_vm3, %v2690_v46  ;;  %v1809_v53 = vld [vmem:[%s456_s20 + $0x8] sm:$0xff] (!%p1792_p9)  ;;  %v827_v59 = vld [vmem:[#allocation2] sm:$0xf] (!%p1792_p9)  ;;  %s2694_s24 = smov (!%p1792_p9), 96   ;;  %s3670_s0 = sld [smem:[#allocation34_spill]] (!%p1792_p9)  ;;  %vm913_vm5 = vcmask (!%p1792_p9), 1043456  }
 0x2cf   : > { %765 = vmatprep.subr.bf16.mxu0 %v2207_v33  ;;  %v1815_v62 = vcombine.low %v827_v59, %v827_v59  ;;  %s2695_s8 = smov 64   ;;  %v817_v7 = vshrl.u32 %v513_v0, 7  ;;  %s1811_s2 = sshll.u32 %s3294_s21, 3  ;;  %vm877_vm9 = vcmask 64512   ;;  %vm900_vm10 = vcmask 7168   ;;  %v1034_v13 = vld [vmem:[#allocation4 + $0x8] sm:$0xff] }
 0x2d0   : > { %v821_v10 = vstv %s1811_s2  ;;  %s2696_s25 = smov 32   ;;  %vm1103_vm11 = vcmask 523520   ;;  %vm1244_vm12 = vcmask 785920   ;;  %vm1385_vm13 = vcmask 1048320  }
 0x2d1   : > { %v822_v11 = vadd.s32 %v821_v10, %v3297_v1  ;;  %v876_v1 = vld [vmem:[#allocation3] sm:$0xff]  ;;  %v1016_v10 = vld [vmem:[#allocation3 + $0x8] sm:$0xff] }
 0x2d2   : > { %766 = vmatpush1.bf16.msra.mxu0 %v2209_v34 }
 0x2d3   : > { %767 = vmatprep.subr.bf16.mxu0 %v2210_v35 }
 0x2d4   : > { %s1810_s27 = sshll.u32 %s3670_s0, 3 }
 0x2d5   : > { %v818_v8 = vstv %s1810_s27 }
 0x2d6   : > { %768 = vmatpush1.bf16.msra.mxu0 %v2212_v36  ;;  %v819_v9 = vadd.s32 %v818_v8, %v817_v7  ;;  %v902_v8 = vld [vmem:[#allocation5] sm:$0xff] }
 0x2d7   : > { %769 = vmatprep.subr.bf16.mxu0 %v2213_v37 }
 0x2d8   : > { %v1812_v12 = vadd.s32 4294967293, %v819_v9  ;;  %vm823_vm6 = vcmp.le.s32.totalorder %v822_v11, %v819_v9 }
 0x2da   : > { %770 = vmatpush1.bf16.msra.mxu0 %v2215_v38  ;;  %vm825_vm7 = vcmp.ge.s32.totalorder %v822_v11, %v1812_v12 }
 0x2db   : > { %771 = vmatprep.subr.bf16.mxu0 %v2216_v39  ;;  %vm3349_vm8 = vmand %vm823_vm6, %vm825_vm7  ;;  %v1158_v39 = vld [vmem:[#allocation3 + $0x10] sm:$0xff] }
 0x2de   : > { %772 = vmatpush1.bf16.msra.mxu0 %v2218_v40 }
 0x2df   : > { %773 = vmatprep.subr.bf16.mxu0 %v2219_v41 }
 0x2e2   : > { %774 = vmatpush1.bf16.msra.mxu0 %v2221_v42 }
 0x2e3   : > { %775 = vmatprep.subr.bf16.mxu0 %v2222_v43 }
 0x2e6   : > { %776 = vmatpush1.bf16.msra.mxu0 %v2224_v44 }
 0x2e7   : > { %1914 = vmatprep.subr.bf16.mxu0 %v2690_v46 }
 0x2e9   : > { %794 = vmatmul.mubr.bf16.vlgmr.msra.gmra.mrb[0].mxu0 %v664_v45 }
 0x2ea   : > { %1916 = vmatprep.mubr.msk.bf16.mxu0 %vm2692_vm3, %v2690_v46 }
 0x3bc   : > { %v795_v47 = vpop.f32.mrb[0].mxu0 }
 0x3bd   : > { %805 = vrot.lane.b32.xlu0 %v795_v47, %s2691_s5  ;;  %v797_v48 = vpop.f32.mrb[1].mxu0  ;;  %v809_v56 = vmul.f32 %v802_v52, %v795_v47 }
 0x3be   : > { %v799_v49 = vpop.f32.mrb[2].mxu0  ;;  %v3332_v63 = vpack.c.bf16 %v797_v48, %v797_v48 }
 0x3bf   : > { %v800_v50 = vpop.f32.mrb[3].mxu0 }
 0x3c0   : > { %v915_v2 = vsel %vm913_vm5, %v3332_v63, 0 }
 0x3c1   : > { %807 = vrot.lane.b32.xlu0 %v795_v47, %s2693_s16 }
 0x42f   : > { %v806_v51 = vpop.permute.xlu0 %805 }
 0x433   : > { %v808_v54 = vpop.permute.xlu0 %807 }
 0x434   : > { %v810_v55 = vsel %vm3300_vm0, %v806_v51, %v808_v54 }
 0x435   : > { %v811_v57 = vmul.f32 %v1809_v53, %v810_v55 }
 0x437   : > { %v812_v58 = vadd.f32 %v811_v57, %v809_v56 }
 0x439   : > { %v813_v60 = vpack.c.bf16 %v812_v58, %v812_v58 }
 0x43b   : > { %966 = vrot.lane.b32.xlu0 %v813_v60, %s2694_s24  ;;  %v833_v61 = vsel %vm828_vm4, %v813_v60, 0 }
 0x43c   : > { %1891 = vmatpush3.bf16.xpose.msra.mxu1 %v833_v61 }
 0x43d   : > { %1896 = vmatprep.subr.bf16.mxu1 %v2690_v46 }
 0x43f   : > { %963 = vrot.lane.b32.xlu0 %v1815_v62, %s2694_s24 }
 0x443   : > { %1108 = vrot.lane.b32.xlu0 %v813_v60, %s2695_s8  ;;  %1893 = vmatmul.mubr.msk.bf16.vlgmr.msra.gmra.mrb[0].mxu1 %vm828_vm4, %v827_v59 }
 0x444   : > { %1897 = vmatpush3.bf16.msra.mxu1 %v915_v2  ;;  %1898 = vmatprep.mubr.msk.bf16.mxu1 %vm2692_vm3, %v2690_v46 }
 0x445   : > { %1902 = vmatprep.subr.bf16.mxu1 %v2690_v46 }
 0x447   : > { %1106 = vrot.lane.b32.xlu0 %v1815_v62, %s2695_s8 }
 0x44b   : > { %1247 = vrot.lane.b32.xlu0 %v1815_v62, %s2696_s25 }
 0x4ad   : > { %v967_v3 = vpop.permute.xlu0 %966 }
 0x4ae   : > { %v972_v38 = vsel %vm828_vm4, %v967_v3, 0  ;;  %v1299_v3 = vld [vmem:[#allocation3 + $0x18] sm:$0xff] }
 0x4b1   : > { %v964_v4 = vpop.permute.xlu0 %963 }
 0x4b5   : > { %v1109_v5 = vpop.permute.xlu0 %1108 }
 0x4b6   : > { %v1114_v6 = vsel %vm828_vm4, %v1109_v5, 0 }
 0x4b7   : > { %1915 = vmatpush3.bf16.xpose.msra.mxu0 %v1114_v6 }
 0x4b8   : > { %1926 = vmatprep.subr.bf16.mxu0 %v2690_v46 }
 0x4b9   : > { %v1107_v19 = vpop.permute.xlu0 %1106 }
 0x4bd   : > { %v1248_v34 = vpop.permute.xlu0 %1247 }
 0x4be   : > { %1917 = vmatmul.mubr.msk.bf16.vlgmr.msra.gmra.mrb[4].mxu0 %vm828_vm4, %v1107_v19 }
 0x4bf   : > { %1928 = vmatprep.mubr.msk.bf16.mxu0 %vm2692_vm3, %v2690_v46 }
 0x516   : > { %v869_v14 = vpop.f32.mrb[0].mxu1 }
 0x517   : > { %v875_v15 = vsel %vm3349_vm8, %v869_v14, -1e+30  ;;  %v1894_v16 = vpop.f32.mrb[1].mxu1 }
 0x518   : > { %v872_v0 = vpop.f32.mrb[2].mxu1  ;;  %v878_v17 = vsel %vm877_vm9, %v875_v15, -inf }
 0x519   : > { %879 = vmax.xlane.f32.xlu1 %v878_v17  ;;  %v1895_v18 = vpop.f32.mrb[3].mxu1 }
 0x591   : > { %v1150_v23 = vpop.f32.mrb[4].mxu0 }
 0x592   : > { %v3364_v24 = vsel %vm3349_vm8, %v1150_v23, -1e+30  ;;  %v1918_v25 = vpop.f32.mrb[5].mxu0 }
 0x593   : > { %v1159_v26 = vsel %vm877_vm9, %v3364_v24, -inf  ;;  %v1153_v27 = vpop.f32.mrb[6].mxu0 }
 0x594   : > { %1160 = vmax.xlane.f32.xlu0 %v1159_v26  ;;  %v1919_v28 = vpop.f32.mrb[7].mxu0 }
 0x5a6   : > { %v880_v20 = vpop.xlane.xlu1 %879 }
 0x5a7   : > { %v881_v21 = vmax.f32 %v876_v1, %v880_v20 }
 0x5a9   : > { %v882_v22 = vsub.f32 %v876_v1, %v881_v21  ;;  %959 = vst.msk [vmem:[#allocation3] sm:$0xff] %vm900_vm10, %v881_v21  ;;  %887 = vperm.xlu1 %2199, %v881_v21  }
 0x5ab   : > { %v883_v54 = vmul.f32 1.442695, %v882_v22 }
 0x5ad   : > { %1249 = vrot.lane.b32.xlu1 %v813_v60, %s2696_s25 }
 0x621   : > { %v1161_v40 = vpop.xlane.xlu0 %1160 }
 0x622   : > { %v1162_v41 = vmax.f32 %v1158_v39, %v1161_v40 }
 0x624   : > { %1246 = vst.msk [vmem:[#allocation3 + $0x10] sm:$0xff] %vm900_vm10, %v1162_v41  ;;  %v1163_v53 = vsub.f32 %v1158_v39, %v1162_v41 }
 0x626   : > { %v1164_v60 = vmul.f32 1.442695, %v1163_v53 }
 0x628   : > { %v888_v29 = vpop.permute.xlu1 %887 }
 0x629   : > { %v890_v30 = vsub.f32 %v875_v15, %v888_v29 }
 0x62b   : > { %v891_v31 = vmul.f32 1.442695, %v890_v30 }
 0x62c   : > { %v1250_v32 = vpop.permute.xlu1 %1249 }
 0x62d   : > { %2226 = vpow2.f32 %v891_v31  ;;  %v1255_v33 = vsel %vm828_vm4, %v1250_v32, 0 }
 0x62e   : > { %1927 = vmatpush3.bf16.xpose.msra.mxu0 %v1255_v33  ;;  %2228 = vpow2.f32 %v883_v54 }
 0x62f   : > { %2230 = vpow2.f32 %v1164_v60 }
 0x635   : > { %1929 = vmatmul.mubr.msk.bf16.vlgmr.msra.gmra.mrb[8].mxu0 %vm828_vm4, %v1248_v34 }
 0x637   : > { %v2227_v35 = vpop.eup %2226 }
 0x638   : > { %v893_v36 = vsel %vm3349_vm8, %v2227_v35, 0.0  ;;  %v3390_v62 = vpop.eup %2228 }
 0x639   : > { %v909_v37 = vpack.c.bf16 %v893_v36, %v893_v36  ;;  %v3393_v2 = vpop.eup %2230  ;;  %v896_v0 = vsel %vm877_vm9, %v893_v36, 0.0 }
 0x63b   : > { %1899 = vmatmul.mubr.msk.bf16.vlgmr.msra.gmra.mrb[4].mxu1 %vm877_vm9, %v909_v37 }
 0x63c   : > { %1903 = vmatpush3.bf16.xpose.msra.mxu1 %v972_v38  ;;  %1904 = vmatprep.mubr.msk.bf16.mxu1 %vm2692_vm3, %v2690_v46 }
 0x63d   : > { %1908 = vmatprep.subr.bf16.mxu1 %v2690_v46 }
 0x643   : > { %1905 = vmatmul.mubr.msk.bf16.vlgmr.msra.gmra.mrb[8].mxu1 %vm828_vm4, %v964_v4 }
 0x644   : > { %1910 = vmatprep.mubr.msk.bf16.mxu1 %vm2692_vm3, %v2690_v46 }
 0x708   : > { %v1291_v42 = vpop.f32.mrb[8].mxu0 }
 0x709   : > { %v3383_v43 = vsel %vm3349_vm8, %v1291_v42, -1e+30  ;;  %v1930_v44 = vpop.f32.mrb[9].mxu0 }
 0x70a   : > { %v1300_v45 = vsel %vm877_vm9, %v3383_v43, -inf  ;;  %v1294_v47 = vpop.f32.mrb[10].mxu0  ;;  %v894_v44 = vld [vmem:[#allocation4] sm:$0xff] }
 0x70b   : > { %1301 = vmax.xlane.f32.xlu0 %v1300_v45  ;;  %v1931_v48 = vpop.f32.mrb[11].mxu0  ;;  %v895_v45 = vmul.f32 %v3390_v62, %v894_v44 }
 0x70e   : > { %v951_v49 = vpop.f32.mrb[4].mxu1 }
 0x70f   : > { %v1900_v50 = vpop.f32.mrb[5].mxu1 }
 0x710   : > { %v954_v51 = vpop.f32.mrb[6].mxu1  ;;  %v1176_v50 = vld [vmem:[#allocation4 + $0x10] sm:$0xff] }
 0x711   : > { %v1901_v52 = vpop.f32.mrb[7].mxu1  ;;  %v1177_v51 = vmul.f32 %v3393_v2, %v1176_v50 }
 0x716   : > { %v1008_v55 = vpop.f32.mrb[8].mxu1 }
 0x717   : > { %v1014_v56 = vsel %vm3349_vm8, %v1008_v55, -1e+30  ;;  %v1906_v57 = vpop.f32.mrb[9].mxu1 }
 0x718   : > { %v1011_v58 = vpop.f32.mrb[10].mxu1  ;;  %v1017_v59 = vsel %vm877_vm9, %v1014_v56, -inf }
 0x719   : > { %1018 = vmax.xlane.f32.xlu1 %v1017_v59  ;;  %v1907_v61 = vpop.f32.mrb[11].mxu1 }
 0x721   : > { %1168 = vperm.xlu0 %2200, %v1162_v41  }
 0x725   : > { %905 = vperm.xlu0 %2200, %v3390_v62  }
 0x729   : > { %1186 = vperm.xlu0 %2200, %v3393_v2  }
 0x798   : > { %v1302_v4 = vpop.xlane.xlu0 %1301 }
 0x799   : > { %v1303_v5 = vmax.f32 %v1299_v3, %v1302_v4 }
 0x79b   : > { %v1304_v6 = vsub.f32 %v1299_v3, %v1303_v5  ;;  %1387 = vst.msk [vmem:[#allocation3 + $0x18] sm:$0xff] %vm900_vm10, %v1303_v5 }
 0x7a0   : > { %v1169_v7 = vpop.permute.xlu0 %1168 }
 0x7a1   : > { %v1171_v19 = vsub.f32 %v3364_v24, %v1169_v7 }
 0x7a3   : > { %v1172_v1 = vmul.f32 1.442695, %v1171_v19 }
 0x7a4   : > { %v906_v9 = vpop.permute.xlu0 %905 }
 0x7a5   : > { %v908_v11 = vmul.f32 %v906_v9, %v902_v8 }
 0x7a6   : > { %v1019_v12 = vpop.xlane.xlu1 %1018 }
 0x7a7   : > { %v957_v14 = vadd.f32 %v951_v49, %v908_v11  ;;  %v1020_v15 = vmax.f32 %v1016_v10, %v1019_v12 }
 0x7a9   : > { %958 = vst.msk [vmem:[#allocation5] sm:$0xff] %vm828_vm4, %v957_v14  ;;  %1026 = vperm.xlu1 %2199, %v1020_v15   ;;  %v1021_v16 = vsub.f32 %v1016_v10, %v1020_v15 }
 0x7aa   : > { %1105 = vst.msk [vmem:[#allocation3 + $0x8] sm:$0xff] %vm900_vm10, %v1020_v15 }
 0x7ab   : > { %v1022_v17 = vmul.f32 1.442695, %v1021_v16 }
 0x7ad   : > { %1050 = vrot.lane.b32.xlu1 %v3332_v63, %s2694_s24  ;;  %2232 = vpow2.f32 %v1022_v17 }
 0x7ae   : > { %2234 = vpow2.f32 %v1172_v1 }
 0x7b0   : > { %v1041_v9 = vld [vmem:[#allocation5] sm:$0xff] }
 0x7b1   : > { %1309 = vperm.xlu1 %2199, %v1303_v5  }
 0x7b5   : > { %1191 = vrot.lane.b32.xlu1 %v3332_v63, %s2695_s8 }
 0x7b7   : > { %v2233_v18 = vpop.eup %2232 }
 0x7b8   : > { %v2235_v20 = vpop.eup %2234  ;;  %v1035_v54 = vmul.f32 %v2233_v18, %v1034_v13 }
 0x7b9   : > { %1332 = vrot.lane.b32.xlu1 %v3332_v63, %s2696_s25  ;;  %v1174_v21 = vsel %vm3349_vm8, %v2235_v20, 0.0  ;;  %v1305_v63 = vmul.f32 1.442695, %v1304_v6 }
 0x7ba   : > { %v1178_v22 = vsel %vm877_vm9, %v1174_v21, 0.0  ;;  %v1190_v39 = vpack.c.bf16 %v1174_v21, %v1174_v21  ;;  %v1317_v21 = vld [vmem:[#allocation4 + $0x18] sm:$0xff] }
 0x7bb   : > { %2236 = vpow2.f32 %v1305_v63 }
 0x7c5   : > { %v3410_v23 = vpop.eup %2236 }
 0x7dd   : > { %897 = vadd.xlane.f32.xlu1 %v896_v0 }
 0x7ee   : > { %1044 = vperm.xlu1 %2199, %v2233_v18  }
 0x812   : > { %1179 = vadd.xlane.f32.xlu1 %v1178_v22  ;;  %v1318_v22 = vmul.f32 %v3410_v23, %v1317_v21 }
 0x823   : > { %1327 = vperm.xlu1 %2199, %v3410_v23  }
 0x828   : > { %v1027_v25 = vpop.permute.xlu1 %1026 }
 0x829   : > { %v1029_v26 = vsub.f32 %v1014_v56, %v1027_v25 }
 0x82b   : > { %v1030_v27 = vmul.f32 1.442695, %v1029_v26 }
 0x82c   : > { %v1051_v28 = vpop.permute.xlu1 %1050 }
 0x82d   : > { %2238 = vpow2.f32 %v1030_v27  ;;  %v1056_v24 = vsel %vm913_vm5, %v1051_v28, 0 }
 0x82e   : > { %1909 = vmatpush3.bf16.msra.mxu1 %v1056_v24 }
 0x82f   : > { %1920 = vmatprep.subr.bf16.mxu1 %v2690_v46 }
 0x830   : > { %v1310_v29 = vpop.permute.xlu1 %1309 }
 0x831   : > { %v1312_v30 = vsub.f32 %v3383_v43, %v1310_v29 }
 0x833   : > { %v1313_v31 = vmul.f32 1.442695, %v1312_v30 }
 0x834   : > { %v1192_v33 = vpop.permute.xlu1 %1191 }
 0x835   : > { %2240 = vpow2.f32 %v1313_v31  ;;  %v1197_v37 = vsel %vm913_vm5, %v1192_v33, 0 }
 0x837   : > { %v2239_v32 = vpop.eup %2238 }
 0x838   : > { %v1032_v34 = vsel %vm3349_vm8, %v2239_v32, 0.0  ;;  %v1333_v38 = vpop.permute.xlu1 %1332 }
 0x839   : > { %v1036_v35 = vsel %vm877_vm9, %v1032_v34, 0.0  ;;  %v1048_v36 = vpack.c.bf16 %v1032_v34, %v1032_v34  ;;  %v1338_v41 = vsel %vm913_vm5, %v1333_v38, 0 }
 0x83a   : > { %1037 = vadd.xlane.f32.xlu0 %v1036_v35 }
 0x83b   : > { %1911 = vmatmul.mubr.msk.bf16.vlgmr.msra.gmra.mrb[12].mxu1 %vm877_vm9, %v1048_v36 }
 0x83c   : > { %1921 = vmatpush3.bf16.msra.mxu1 %v1197_v37  ;;  %1922 = vmatprep.mubr.msk.bf16.mxu1 %vm2692_vm3, %v2690_v46 }
 0x83d   : > { %1932 = vmatprep.subr.bf16.mxu1 %v2690_v46 }
 0x83f   : > { %v2241_v40 = vpop.eup %2240 }
 0x840   : > { %v1315_v42 = vsel %vm3349_vm8, %v2241_v40, 0.0 }
 0x841   : > { %v1331_v43 = vpack.c.bf16 %v1315_v42, %v1315_v42  ;;  %v1319_v8 = vsel %vm877_vm9, %v1315_v42, 0.0 }
 0x843   : > { %1923 = vmatmul.mubr.msk.bf16.vlgmr.msra.gmra.mrb[16].mxu1 %vm877_vm9, %v1190_v39 }
 0x844   : > { %1933 = vmatpush3.bf16.msra.mxu1 %v1338_v41  ;;  %1934 = vmatprep.mubr.msk.bf16.mxu1 %vm2692_vm3, %v2690_v46  ;;  %v1187_v46 = vpop.permute.xlu0 %1186 }
 0x84b   : > { %1935 = vmatmul.mubr.msk.bf16.vlgmr.msra.gmra.mrb[20].mxu1 %vm877_vm9, %v1331_v43 }
 0x86a   : > { %v898_v47 = vpop.xlane.xlu1 %897 }
 0x86b   : > { %v899_v48 = vadd.f32 %v898_v47, %v895_v45 }
 0x86d   : > { %901 = vst.msk [vmem:[#allocation4] sm:$0xff] %vm900_vm10, %v899_v48 }
 0x86e   : > { %v1045_v49 = vpop.permute.xlu1 %1044 }
 0x86f   : > { %v1047_v10 = vmul.f32 %v1045_v49, %v1041_v9 }
 0x89f   : > { %v1180_v52 = vpop.xlane.xlu1 %1179 }
 0x8a0   : > { %v1181_v53 = vadd.f32 %v1180_v52, %v1177_v51 }
 0x8a2   : > { %1182 = vst.msk [vmem:[#allocation4 + $0x10] sm:$0xff] %vm900_vm10, %v1181_v53 }
 0x8a3   : > { %v1328_v17 = vpop.permute.xlu1 %1327 }
 0x8c7   : > { %v1038_v55 = vpop.xlane.xlu0 %1037 }
 0x8c8   : > { %v1039_v56 = vadd.f32 %v1038_v55, %v1035_v54 }
 0x8ca   : > { %1040 = vst.msk [vmem:[#allocation4 + $0x8] sm:$0xff] %vm900_vm10, %v1039_v56 }
 0x90e   : > { %v1092_v57 = vpop.f32.mrb[12].mxu1 }
 0x90f   : > { %v1912_v58 = vpop.f32.mrb[13].mxu1  ;;  %1099 = vrot.lane.b32.xlu0 %v1092_v57, %s2696_s25 }
 0x910   : > { %v1095_v59 = vpop.f32.mrb[14].mxu1 }
 0x911   : > { %v1913_v60 = vpop.f32.mrb[15].mxu1 }
 0x916   : > { %v1233_v61 = vpop.f32.mrb[16].mxu1 }
 0x917   : > { %1240 = vrot.lane.b32.xlu0 %v1233_v61, %s2695_s8  ;;  %v1924_v62 = vpop.f32.mrb[17].mxu1 }
 0x918   : > { %v1236_v2 = vpop.f32.mrb[18].mxu1 }
 0x919   : > { %v1925_v3 = vpop.f32.mrb[19].mxu1 }
 0x91e   : > { %v1374_v4 = vpop.f32.mrb[20].mxu1 }
 0x91f   : > { %v1936_v5 = vpop.f32.mrb[21].mxu1  ;;  %1381 = vrot.lane.b32.xlu1 %v1374_v4, %s2694_s24 }
 0x920   : > { %v1377_v6 = vpop.f32.mrb[22].mxu1 }
 0x921   : > { %v1937_v7 = vpop.f32.mrb[23].mxu1 }
 0x936   : > { %1320 = vadd.xlane.f32.xlu0 %v1319_v8 }
 0x981   : > { %v1100_v11 = vpop.permute.xlu0 %1099 }
 0x982   : > { %v1102_v12 = vadd.f32 %v1100_v11, %v1047_v10 }
 0x984   : > { %1104 = vst.msk [vmem:[#allocation5] sm:$0xff] %vm1103_vm11, %v1102_v12 }
 0x989   : > { %v1241_v16 = vpop.permute.xlu0 %1240 }
 0x98b   : > { %v1183_v14 = vld [vmem:[#allocation5] sm:$0xff] }
 0x98c   : > { %v1189_v15 = vmul.f32 %v1187_v46, %v1183_v14 }
 0x98e   : > { %v1243_v0 = vadd.f32 %v1241_v16, %v1189_v15 }
 0x990   : > { %1245 = vst.msk [vmem:[#allocation5] sm:$0xff] %vm1244_vm12, %v1243_v0 }
 0x991   : > { %v1382_v1 = vpop.permute.xlu1 %1381 }
 0x997   : > { %v1324_v18 = vld [vmem:[#allocation5] sm:$0xff] }
 0x998   : > { %v1330_v19 = vmul.f32 %v1328_v17, %v1324_v18 }
 0x99a   : > { %v1384_v20 = vadd.f32 %v1382_v1, %v1330_v19 }
 0x99c   : > { %1386 = vst.msk [vmem:[#allocation5] sm:$0xff] %vm1385_vm13, %v1384_v20 }
 0x9c3   : > { %v1321_v63 = vpop.xlane.xlu0 %1320 }
 0x9c4   : > { %v1322_v25 = vadd.f32 %v1321_v63, %v1318_v22 }
 0x9c6   : > { %1323 = vst.msk [vmem:[#allocation4 + $0x18] sm:$0xff] %vm900_vm10, %v1322_v25 }
 0x9c7 PF: > { %s3673_s13 = sld [smem:[#allocation33_spill]] }
 0x9cd   : > { %p1822_p10 = scmp.ne.s32.totalorder %s3673_s13, 1 }
 0x9ce   : > { %v1392_v26 = vld [vmem:[#allocation4] sm:$0xff] (!%p1822_p10)  ;;  %v1404_v27 = vld [vmem:[#allocation4 + $0x8] sm:$0xff] (!%p1822_p10)  ;;  %v1416_v28 = vld [vmem:[#allocation4 + $0x10] sm:$0xff] (!%p1822_p10)  ;;  %v2697_v24 = vmov (!%p1822_p10), 0   ;;  %v2698_v34 = vmov (!%p1822_p10), 0.0   ;;  %vm2699_vm14 = vmmov (!%p1822_p10), 0  }
 0x9cf   : > { %1391 = sbr.rel (%p1822_p10) target bundleno = 2907 (0xb5b), region = 88  ;;  %2242 = vset.pattern.permute.xlu0 (!%p1822_p10), %v2697_v24  ;;  %2252 = vrcp.f32 (!%p1822_p10), %v1392_v26  ;;  %2243 = vset.pattern.permute.xlu1 (!%p1822_p10), %v2697_v24  ;;  %v1428_v29 = vld [vmem:[#allocation4 + $0x18] sm:$0xff] (!%p1822_p10)  ;;  %v2245_v35 = vld [vmem:[#allocation14 + $0x8] sm:$0xff] (!%p1822_p10)   ;;  %v2246_v36 = vld [vmem:[#allocation14 + $0x10] sm:$0xff] (!%p1822_p10)   ;;  %vm1401_vm15 = vcmask (!%p1822_p10), 261120   ;;  %vm1413_vm0 = vcmask (!%p1822_p10), 523520  }
 0x9d0   : > { %2254 = vrcp.f32 (!%p1822_p10), %v1404_v27  ;;  %v2244_v33 = vld [vmem:[#allocation14] sm:$0xff] (!%p1822_p10)   ;;  %1938 = vmatprep.subr.bf16.mxu0 (!%p1822_p10), %v2698_v34  ;;  %v2247_v37 = vld [vmem:[#allocation14 + $0x18] sm:$0xff] (!%p1822_p10)   ;;  %v2249_v39 = vld [vmem:[#allocation14 + $0x28] sm:$0xff] (!%p1822_p10)   ;;  %1954 = vmatprep.mubr.msk.bf16.mxu0 (!%p1822_p10), %vm2699_vm14, %v2698_v34  ;;  %vm1425_vm1 = vcmask (!%p1822_p10), 785920   ;;  %vm1437_vm2 = vcmask (!%p1822_p10), 1048320  }
 0x9d1   : > { %2256 = vrcp.f32 (!%p1822_p10), %v1416_v28  ;;  %1939 = vmatpush3.bf16.msra.mxu0 (!%p1822_p10), %v2244_v33  ;;  %v2248_v38 = vld [vmem:[#allocation14 + $0x20] sm:$0xff] (!%p1822_p10)   ;;  %v2250_v40 = vld [vmem:[#allocation14 + $0x30] sm:$0xff] (!%p1822_p10)   ;;  %v2251_v41 = vld [vmem:[#allocation14 + $0x38] sm:$0xff] (!%p1822_p10)  }
 0x9d2   : > { %2258 = vrcp.f32 (!%p1822_p10), %v1428_v29  ;;  %1940 = vmatprep.subr.bf16.mxu0 (!%p1822_p10), %v2698_v34  ;;  %v1394_v42 = vld [vmem:[#allocation5] sm:$0xff] (!%p1822_p10) }
 0x9d5   : > { %1941 = vmatpush3.bf16.msra.mxu0 (!%p1822_p10), %v2245_v35 }
 0x9d6   : > { %1942 = vmatprep.subr.bf16.mxu0 %v2698_v34 }
 0x9d9   : > { %v2253_v23 = vpop.eup %2252  ;;  %1943 = vmatpush3.bf16.msra.mxu0 %v2246_v36 }
 0x9da   : > { %v2255_v30 = vpop.eup %2254  ;;  %1397 = vperm.xlu0 %2242, %v2253_v23   ;;  %1944 = vmatprep.subr.bf16.mxu0 %v2698_v34 }
 0x9db   : > { %v2257_v31 = vpop.eup %2256 }
 0x9dc   : > { %1421 = vperm.xlu1 %2243, %v2257_v31   ;;  %v2259_v32 = vpop.eup %2258 }
 0x9dd   : > { %1945 = vmatpush3.bf16.msra.mxu0 %v2247_v37 }
 0x9de   : > { %1409 = vperm.xlu0 %2242, %v2255_v30   ;;  %1946 = vmatprep.subr.bf16.mxu0 %v2698_v34 }
 0x9e0   : > { %1433 = vperm.xlu1 %2243, %v2259_v32  }
 0x9e1   : > { %1947 = vmatpush3.bf16.msra.mxu0 %v2248_v38 }
 0x9e2   : > { %1948 = vmatprep.subr.bf16.mxu0 %v2698_v34 }
 0x9e5   : > { %1949 = vmatpush3.bf16.msra.mxu0 %v2249_v39 }
 0x9e6   : > { %1950 = vmatprep.subr.bf16.mxu0 %v2698_v34 }
 0x9e9   : > { %1951 = vmatpush3.bf16.msra.mxu0 %v2250_v40 }
 0x9ea   : > { %1952 = vmatprep.subr.bf16.mxu0 %v2698_v34 }
 0x9ed   : > { %1953 = vmatpush3.bf16.msra.mxu0 %v2251_v41 }
 0xa59   : > { %v1398_v43 = vpop.permute.xlu0 %1397 }
 0xa5a   : > { %v1400_v44 = vmul.f32 %v1398_v43, %v1394_v42 }
 0xa5b   : > { %v1422_v49 = vpop.permute.xlu1 %1421 }
 0xa5c   : > { %1402 = vst.msk [vmem:[#allocation5] sm:$0xff] %vm1401_vm15, %v1400_v44 }
 0xa5d   : > { %v1410_v47 = vpop.permute.xlu0 %1409 }
 0xa5f   : > { %v1434_v52 = vpop.permute.xlu1 %1433 }
 0xa63   : > { %v1406_v45 = vld [vmem:[#allocation5] sm:$0xff] }
 0xa64   : > { %v1412_v48 = vmul.f32 %v1410_v47, %v1406_v45 }
 0xa66   : > { %1414 = vst.msk [vmem:[#allocation5] sm:$0xff] %vm1413_vm0, %v1412_v48 }
 0xa6d   : > { %v1418_v50 = vld [vmem:[#allocation5] sm:$0xff] }
 0xa6e   : > { %v1424_v51 = vmul.f32 %v1422_v49, %v1418_v50 }
 0xa70   : > { %1426 = vst.msk [vmem:[#allocation5] sm:$0xff] %vm1425_vm1, %v1424_v51 }
 0xa77   : > { %v1430_v53 = vld [vmem:[#allocation5] sm:$0xff] }
 0xa78   : > { %v1436_v46 = vmul.f32 %v1434_v52, %v1430_v53 }
 0xa7a   : > { %1438 = vst.msk [vmem:[#allocation5] sm:$0xff] %vm1437_vm2, %v1436_v46 }
 0xa81   : > { %v1439_v13 = vld [vmem:[#allocation5] sm:$0xff] }
 0xa82   : > { %v1440_v54 = vpack.c.bf16 %v1439_v13, %v1439_v13 }
 0xa84   : > { %1955 = vmatmul.mubr.bf16.vlgmr.msra.gmra.mrb[0].mxu0 %v1440_v54 }
 0xb57   : > { %v1539_v55 = vpop.f32.mrb[0].mxu0 }
 0xb58   : > { %1545 = vst [vmem:[%s3304_s4] sm:$0xff] %v1539_v55  ;;  %v1956_v56 = vpop.f32.mrb[1].mxu0 }
 0xb59   : > { %v1542_v57 = vpop.f32.mrb[2].mxu0 }
 0xb5a   : > { %v1957_v58 = vpop.f32.mrb[3].mxu0 }
 0xb5b PF: > { %s3674_s7 = sld [smem:[#allocation35_spill]]  ;;  %s3675_s29 = sld [smem:[#allocation34_spill]] }
 0xb5c   : > { %s1562_s17 = sshll.u32 %s3304_s4, 4  ;;  %s3676_s9 = sld [smem:[#allocation53_spill]]  ;;  %s3447_s17 = int_to_ptr.vmem [resolvable:$true] %s1562_s17 }
 0xb5d   : > { %s1547_s16 = scalar_lea.sflag [#allocation8], %s3248_s18  ;;  %s2464_s24 = scalar_lea.vmem %s3447_s17, 128 }
 0xb5e   : > { %p2465_p8 = scmp.ne.s32.totalorder %s3447_s17, %s2464_s24  ;;  %p3678_p5 = scmp.ne.s32.totalorder %s3631_s23, 0 }
 0xb5f   : > { %s2700_s0 = smov [#allocation18]  }
 0xb60   : > { %p2466_p0 = pnand %p2465_p8, %p3678_p5  ;;  %s2468_s8 = sshll.u32 %s2700_s0, 4  ;;  %s2469_s8 = int_to_ptr.vmem [resolvable:$false] %s2468_s8 }
 0xb61   : > { %s1832_s20 = sshll.u32 %s3674_s7, 1  ;;  %s2470_s4 = scalar_lea.vmem %s2469_s8, 256 }
 0xb62   : > { %s1558_s6 = sadd.s32 %s3675_s29, %s1832_s20  ;;  %s3677_s5 = smov %s3676_s9 }
 0xb63   : > { %s1833_s30 = sshll.u32 %s1558_s6, 7  ;;  %p2467_p11 = pneg %p2466_p0 }
 0xb64   : > { %s1560_s14 = scalar_lea.hbm %s3676_s9, %s1833_s30  ;;  %p2471_p1 = scmp.lt.s32.totalorder %s3447_s17, %s2469_s8 }
 0xb65   : > { %p2472_p12 = scmp.lt.s32.totalorder %s2470_s4, %s2464_s24 }
 0xb67   : > { %p2473_p6 = por %p2472_p12, %p2471_p1 }
 0xb69   : > { %p2474_p2 = pnand %p2473_p6, %p2467_p11 }
 0xb6b   : > { %2477 = shalt.err (!%p2474_p2)
}
 0xb6c   : > { %s2478_s27 = scalar_lea.hbm %s1560_s14, 128  ;;  %s2482_s25 = scalar_lea.hbm %s3677_s5, 512 }
 0xb6d   : > { %p2479_p4 = scmp.ne.s32.totalorder %s1560_s14, %s2478_s27  ;;  %p2483_p3 = scmp.lt.u32.totalorder %s1560_s14, %s3677_s5 }
 0xb6e   : > { %p2484_p9 = scmp.lt.u32.totalorder %s2482_s25, %s2478_s27  ;;  %p2486_p8 = scmp.lt.u32.totalorder %s2478_s27, %s1560_s14 }
 0xb6f   : > { %p2480_p13 = pnand %p2479_p4, %p3678_p5 }
 0xb70   : > { %p2485_p10 = por %p2484_p9, %p2483_p3 }
 0xb71   : > { %p2481_p7 = pneg %p2480_p13 }
 0xb72   : > { %p2487_p0 = por %p2486_p8, %p2485_p10 }
 0xb74   : > { %p2488_p11 = pnand %p2487_p0, %p2481_p7 }
 0xb76   : > { %2491 = shalt.err (!%p2488_p11)
}
 0xb77   : > { %1978 = dma.vmem_to_hbm [thread:$0]  (%p3678_p5), %s3447_s17, 128, %s1560_s14, %s1547_s16  }
 0xb78 PF: > { %s3679_s29 = sld [smem:[#allocation26_spill]]  ;;  %p2014_p1 = scmp.ge.s32.totalorder %s2670_s19, 2 }
 0xb79   : > { %s1574_s20 = sand.u32 1, %s2634_s10  }
 0xb7a   : > { %s1575_s6 = scalar_lea.sflag [#allocation8], %s1574_s20 }
 0xb7e   : > { %p3680_p12 = scmp.ne.s32.totalorder %s3679_s29, 0 }
 0xb80   : > { %p2004_p6 = pnand %p2014_p1, %p3680_p12 }
 0xb82   : > { %2593 = dma.done.wait (!%p2004_p6), %s1575_s6, 128  }
 0xb83   : > { %2595 = vsyncadd (!%p2004_p6), %s1575_s6, 4294967168  ;;  %s30_s19 = sadd.s32 1, %s2670_s19   ;;  %s3682_s24 = sld [smem:[#allocation27_spill]] }
 0xb84   : > { %p3474_p2 = scmp.ge.s32.totalorder %s30_s19, 10   ;;  %s3683_s23 = sld [smem:[#allocation45_spill]] }
 0xb85   : > { %s3684_s17 = sld [smem:[#allocation28_spill]]  ;;  %s3685_s29 = sld [smem:[#allocation44_spill]] }
 0xb86   : > { %s3686_s15 = sld [smem:[#allocation30_spill]]  ;;  %s3687_s8 = sld [smem:[#allocation31_spill]] }
 0xb87   : > { %s3688_s21 = sld [smem:[#allocation32_spill]]  ;;  %s3689_s14 = sld [smem:[#allocation43_spill]] }
 0xb88   : > { %s3690_s13 = sld [smem:[#allocation36_spill]]  ;;  %s3691_s16 = sld [smem:[#allocation37_spill]] }
 0xb89   : > { %s3692_s0 = sld [smem:[#allocation38_spill]]  ;;  %s3693_s4 = sld [smem:[#allocation40_spill]] }
 0xb8a   : > { %s3694_s18 = sld [smem:[#allocation41_spill]]  ;;  %s3695_s25 = smov %s2606_s26 }
 0xb8b   : > { %s3696_s2 = sld [smem:[#allocation42_spill]]  ;;  %s3697_s26 = smov %s3683_s23 }
 0xb8c   : > { %s3698_s27 = smov %s2614_s28  ;;  %s3700_s28 = smov %s3684_s17 }
 0xb8d   : > { %s3701_s30 = smov %s3686_s15  ;;  %s3702_s9 = smov %s3146_s12 }
 0xb8e   : > { %s3703_s10 = smov %s2638_s11  ;;  %s3704_s11 = smov %s3688_s21 }
 0xb8f   : > { %s3705_s12 = smov %s3689_s14  ;;  %s3706_s14 = smov %s3691_s16 }
 0xb90   : > { %s3707_s15 = smov %s3692_s0  ;;  %s3708_s16 = smov %s3693_s4 }
 0xb91   : > { %s3709_s17 = smov %s3694_s18  ;;  %s3710_s18 = smov %s3696_s2 }
 0xb92   :  { %29 = sbr.rel (!%p3474_p2) target bundleno = 27 (0x1b), region = 165 }
 0xb99   :  { %1580 = vsyncpa [#allocation7], 1 }
 0xb9a   :  { %1582 = vsyncpa [#allocation7 + $0x1], 1 }
 0xb9b   :  { %1583 = vsyncpa [#allocation10], 1 }
 0xb9c   :  { %1585 = vsyncpa [#allocation10 + $0x1], 1 }
 0xb9d   :  { %1586 = vsyncpa [#allocation13], 1 }
 0xb9e   :  { %1587 = vsyncpa [#allocation16], 1 }
 0xb9f   :  { %1589 = vsyncpa [#allocation16 + $0x1], 1 }
 0xba0   :  { %1590 = vsyncpa [#allocation8], 1 }
 0xba1   :  { %1592 = vsyncpa [#allocation8 + $0x1], 1 }

</bundles_post_ra>
